<compile_context>
chip_gen: v7x
topology: tpu7x:2x2x1
jax: 0.10.0
libtpu: 0.0.40
codegen_flags: <defaults>
</compile_context>

<pallas_src>
import functools
import math

import jax
import jax.numpy as jnp
from jax import lax
from jax.experimental import pallas as pl
from jax.experimental.pallas import tpu as pltpu


def _sublane(dtype) -> int:
    """Minimum second-to-last tile multiple for this dtype (8 f32, 16 bf16)."""
    return max(8, 32 // jnp.dtype(dtype).itemsize)


@functools.lru_cache(maxsize=1)
def _tpu_config():
    """Per-generation knobs: softmax-exp dtype (EUP), VMEM budget, linear tiles."""
    kind = ""
    try:
        kind = jax.devices()[0].device_kind.lower()
    except Exception:
        pass
    if "v7" in kind:   # 64 MiB VMEM / TC, bf16-capable EUP
        return {"exp_dtype": jnp.bfloat16, "vmem_limit": 40 * 1024 * 1024,
                "lin_tiles": (256, 256, 512)}
    if "v6" in kind:   # 128 MiB VMEM, bf16-capable EUP
        return {"exp_dtype": jnp.bfloat16, "vmem_limit": 64 * 1024 * 1024,
                "lin_tiles": (512, 512, 1024)}
    if "v5" in kind:   # 128 MiB VMEM, f32-only EUP/VPU
        return {"exp_dtype": jnp.float32, "vmem_limit": 64 * 1024 * 1024,
                "lin_tiles": (512, 512, 1024)}
    # Unknown generation: conservative settings safe on every chip.
    return {"exp_dtype": jnp.float32, "vmem_limit": 32 * 1024 * 1024,
            "lin_tiles": (256, 256, 512)}


def _pick_tile(dim: int, preferred: int, aligns) -> int:
    """Largest tile <= preferred that divides `dim` and is aligned; falls back
    to the full dim (always legal). Used for the (small) sequence axes."""
    if dim <= preferred:
        return dim
    for a in aligns:
        t = (preferred // a) * a
        while t >= a:
            if dim % t == 0:
                return t
            t -= a
    return dim


def _tile_and_pad(dim: int, preferred: int, align: int):
    """(tile, padded_dim). Never inflates the tile past `preferred`; if no
    aligned divisor exists, the array is padded up to a tile multiple instead
    (keeps VMEM usage bounded on awkward shapes)."""
    if dim <= preferred:
        return dim, dim
    t = max((preferred // align) * align, align)
    tt = t
    while tt >= align:
        if dim % tt == 0:
            return tt, dim
        tt -= align
    return t, ((dim + t - 1) // t) * t


# ---------------------------------------------------------------------------
# Bias-fused tiled matmul:  y = x @ w + b   (w in (in, out) layout), bf16 MXU
# ---------------------------------------------------------------------------

def _linear_kernel(x_ref, w_ref, b_ref, o_ref, acc_ref):
    k = pl.program_id(2)

    @pl.when(k == 0)
    def _():
        # Fuse the bias add by initializing the f32 accumulator with it.
        acc_ref[...] = jnp.broadcast_to(
            b_ref[...].astype(jnp.float32), acc_ref.shape)

    acc_ref[...] += jnp.dot(x_ref[...], w_ref[...],
                            preferred_element_type=jnp.float32)

    @pl.when(k == pl.num_programs(2) - 1)
    def _():
        o_ref[...] = acc_ref[...].astype(o_ref.dtype)


def pallas_linear(x2d, w, b, *, tm, tn, tk, out_dtype=None,
                  compute_dtype=jnp.bfloat16, vmem_limit=32 * 1024 * 1024):
    """x2d: (M, K), w: (K, N), b: (N,) -> (M, N). MXU math in `compute_dtype`
    (bf16), f32 accumulation, output cast to `out_dtype`."""
    M, K = x2d.shape
    K2, N = w.shape
    assert K == K2, "weight in/out mismatch"
    out_dtype = x2d.dtype if out_dtype is None else out_dtype

    x_c = x2d.astype(compute_dtype)
    w_c = w.astype(compute_dtype)
    b_c = b.astype(jnp.float32).reshape(1, N)

    sub = _sublane(compute_dtype)
    tm, Mp = _tile_and_pad(M, tm, sub)
    tn, Np = _tile_and_pad(N, tn, 128)
    tk, Kp = _tile_and_pad(K, tk, 128)
    if (Mp, Kp) != (M, K):
        x_c = jnp.pad(x_c, ((0, Mp - M), (0, Kp - K)))
    if (Kp, Np) != (K, N):
        w_c = jnp.pad(w_c, ((0, Kp - K), (0, Np - N)))
    if Np != N:
        b_c = jnp.pad(b_c, ((0, 0), (0, Np - N)))

    out = pl.pallas_call(
        _linear_kernel,
        out_shape=jax.ShapeDtypeStruct((Mp, Np), out_dtype),
        grid_spec=pltpu.PrefetchScalarGridSpec(
            num_scalar_prefetch=0,
            grid=(Mp // tm, Np // tn, Kp // tk),
            in_specs=[
                pl.BlockSpec((tm, tk), lambda i, j, k: (i, k)),
                pl.BlockSpec((tk, tn), lambda i, j, k: (k, j)),
                pl.BlockSpec((1, tn), lambda i, j, k: (0, j)),
            ],
            out_specs=pl.BlockSpec((tm, tn), lambda i, j, k: (i, j)),
            scratch_shapes=[pltpu.VMEM((tm, tn), jnp.float32)],
        ),
        compiler_params=pltpu.CompilerParams(
            dimension_semantics=("parallel", "parallel", "arbitrary"),
            vmem_limit_bytes=vmem_limit,
        ),
    )(x_c, w_c, b_c)
    if (Mp, Np) != (M, N):
        out = out[:M, :N]
    return out


# ---------------------------------------------------------------------------
# Flash attention (online softmax), packed-head layout.
#   Grid = (B, q_tiles, kv_tiles); heads are a static loop inside the body so
#   the output tile is a lane-dense (1, tq, d_model) write.
# ---------------------------------------------------------------------------

def _flash_attn_kernel(q_ref, k_ref, v_ref, o_ref, m_sc, l_sc, acc_sc, *,
                       h, d_k, exp_dtype):
    kv = pl.program_id(2)

    @pl.when(kv == 0)
    def _():
        m_sc[...] = jnp.full(m_sc.shape, -jnp.inf, jnp.float32)
        l_sc[...] = jnp.zeros(l_sc.shape, jnp.float32)
        acc_sc[...] = jnp.zeros(acc_sc.shape, jnp.float32)

    for hh in range(h):                       # static unroll over heads
        sl = slice(hh * d_k, (hh + 1) * d_k)
        q_h = q_ref[0, :, sl]                 # (tq,  d_k)
        k_h = k_ref[0, :, sl]                 # (tkv, d_k)
        v_h = v_ref[0, :, sl]                 # (tkv, d_k)

        # Scores on the MXU, f32 accumulation. 1/sqrt(d_k) is folded into Wq.
        s = lax.dot_general(q_h, k_h, (((1,), (1,)), ((), ())),
                            preferred_element_type=jnp.float32)   # (tq, tkv)
        # TODO(synk): masked_fill(mask == 0, -1e9) branch not implemented; the
        # reference module's `if mask:` is False for mask=None (supported path).

        m_prev = m_sc[:, hh:hh + 1]                                # (tq, 1)
        m_new = jnp.maximum(m_prev, s.max(axis=-1, keepdims=True))
        alpha = jnp.exp(m_prev - m_new)                            # f32
        # exp in bf16 on v6e/v7x (bf16 EUP, ~2x throughput), f32 on v5e.
        p = jnp.exp((s - m_new).astype(exp_dtype))                 # (tq, tkv)
        l_sc[:, hh:hh + 1] = (alpha * l_sc[:, hh:hh + 1]
                              + p.astype(jnp.float32).sum(axis=-1, keepdims=True))
        pv = jnp.dot(p.astype(v_h.dtype), v_h,
                     preferred_element_type=jnp.float32)           # (tq, d_k)
        acc_sc[0, :, sl] = alpha * acc_sc[0, :, sl] + pv
        m_sc[:, hh:hh + 1] = m_new

    @pl.when(kv == pl.num_programs(2) - 1)
    def _():
        for hh in range(h):
            sl = slice(hh * d_k, (hh + 1) * d_k)
            inv_l = pl.reciprocal(l_sc[:, hh:hh + 1], approx=True)  # EUP slot
            o_ref[0, :, sl] = (acc_sc[0, :, sl] * inv_l).astype(o_ref.dtype)


def _col_index_map(col, kv_axis):
    """Index map selecting a d_model-wide column block `col` of the input."""
    if kv_axis:
        return lambda b, i, j: (b, j, col)
    return lambda b, i, j: (b, i, col)


def pallas_flash_attention(q_arr, k_arr, v_arr, *, d_model, h, exp_dtype,
                           q_col=0, k_col=0, v_col=0, tq=512, tkv=512,
                           vmem_limit=32 * 1024 * 1024):
    """q/k/v arrays are (B, S, n*d_model); `*_col` picks the d_model-wide block
    (used to read Q/K/V straight out of a fused (B, S, 3*d_model) projection
    without slicing copies). Returns (B, Sq, d_model)."""
    B, Sq, _ = q_arr.shape
    _, Skv, _ = k_arr.shape
    d_k = d_model // h
    sub = _sublane(q_arr.dtype)
    tq = _pick_tile(Sq, tq, (sub,))
    tkv = _pick_tile(Skv, tkv, (128, sub))   # lane-dense score tiles preferred

    kernel = functools.partial(_flash_attn_kernel, h=h, d_k=d_k,
                               exp_dtype=exp_dtype)
    return pl.pallas_call(
        kernel,
        out_shape=jax.ShapeDtypeStruct((B, Sq, d_model), q_arr.dtype),
        grid_spec=pltpu.PrefetchScalarGridSpec(
            num_scalar_prefetch=0,
            grid=(B, Sq // tq, Skv // tkv),
            in_specs=[
                pl.BlockSpec((1, tq, d_model), _col_index_map(q_col, False)),
                pl.BlockSpec((1, tkv, d_model), _col_index_map(k_col, True)),
                pl.BlockSpec((1, tkv, d_model), _col_index_map(v_col, True)),
            ],
            out_specs=pl.BlockSpec((1, tq, d_model), _col_index_map(0, False)),
            scratch_shapes=[
                pltpu.VMEM((tq, h), jnp.float32),          # running max / head
                pltpu.VMEM((tq, h), jnp.float32),          # running denom / head
                pltpu.VMEM((1, tq, d_model), jnp.float32),  # output accumulator
            ],
        ),
        # Note: on v7x, pltpu.CORE_PARALLEL on the leading axis could shard the
        # grid across both TensorCores; left as plain "parallel" for safety.
        compiler_params=pltpu.CompilerParams(
            dimension_semantics=("parallel", "parallel", "arbitrary"),
            vmem_limit_bytes=vmem_limit,
        ),
    )(q_arr, k_arr, v_arr)


# ---------------------------------------------------------------------------
# Full MultiHeadAttentionBlock forward
# ---------------------------------------------------------------------------

def multi_head_attention_block(q, k, v, params, *, h, mask=None,
                               dropout_p=0.0):
    """params: dict with w_q,b_q,w_k,b_k,w_v,b_v,w_o,b_o.
    Weights are (in_features, out_features), i.e. torch Linear.weight.T."""
    if mask is not None:
        # TODO(synk): attention mask (masked_fill with -1e9) not implemented.
        raise NotImplementedError("mask is not supported by this kernel")
    if dropout_p:
        # TODO(synk): training-mode dropout on attention probabilities is not
        # implemented; this is the eval / p=0 (identity) path.
        pass

    cfg = _tpu_config()
    cdt = jnp.bfloat16            # MXU compute dtype on all TPU generations
    tm, tn, tk = cfg["lin_tiles"]
    vmem = cfg["vmem_limit"]

    B, Sq, D = q.shape
    _, Skv, _ = k.shape
    assert D % h == 0, "d_model is not divisible by h"
    d_k = D // h
    scale = 1.0 / math.sqrt(d_k)
    out_dtype = q.dtype

    # Fold 1/sqrt(d_k) into the Q projection (zero per-step cost in the kernel).
    w_q = params["w_q"] * scale
    b_q = params["b_q"] * scale

    fused_qkv = (q is k) and (k is v) and (D % 128 == 0)
    if fused_qkv:
        # Self-attention: one (D, 3D) projection; flash reads Q/K/V as column
        # blocks of the same array (no slicing copies, no transposes).
        w_qkv = jnp.concatenate([w_q, params["w_k"], params["w_v"]], axis=1)
        b_qkv = jnp.concatenate([b_q, params["b_k"], params["b_v"]])
        qkv = pallas_linear(q.reshape(B * Sq, D), w_qkv, b_qkv,
                            tm=tm, tn=tn, tk=tk, out_dtype=cdt,
                            compute_dtype=cdt, vmem_limit=vmem)
        qkv = qkv.reshape(B, Sq, 3 * D)
        ctx = pallas_flash_attention(qkv, qkv, qkv, d_model=D, h=h,
                                     exp_dtype=cfg["exp_dtype"],
                                     q_col=0, k_col=1, v_col=2,
                                     vmem_limit=vmem)
    else:
        query = pallas_linear(q.reshape(B * Sq, D), w_q, b_q,
                              tm=tm, tn=tn, tk=tk, out_dtype=cdt,
                              compute_dtype=cdt, vmem_limit=vmem)
        key = pallas_linear(k.reshape(B * Skv, D), params["w_k"], params["b_k"],
                            tm=tm, tn=tn, tk=tk, out_dtype=cdt,
                            compute_dtype=cdt, vmem_limit=vmem)
        value = pallas_linear(v.reshape(B * Skv, D), params["w_v"], params["b_v"],
                              tm=tm, tn=tn, tk=tk, out_dtype=cdt,
                              compute_dtype=cdt, vmem_limit=vmem)
        ctx = pallas_flash_attention(query.reshape(B, Sq, D),
                                     key.reshape(B, Skv, D),
                                     value.reshape(B, Skv, D),
                                     d_model=D, h=h,
                                     exp_dtype=cfg["exp_dtype"],
                                     vmem_limit=vmem)

    # TODO(synk): the full attention_scores matrix (stored as an attribute in
    # the PyTorch module) is never materialized by the flash kernel.
    # ctx is already in the merged-head (B, Sq, d_model) layout -> no transposes.
    out = pallas_linear(ctx.reshape(B * Sq, D), params["w_o"], params["b_o"],
                        tm=tm, tn=tn, tk=tk, out_dtype=out_dtype,
                        compute_dtype=cdt, vmem_limit=vmem)
    return out.reshape(B, Sq, D)


# ---------------------------------------------------------------------------
# Demo + reference check
# ---------------------------------------------------------------------------

if __name__ == "__main__":
    batch, seq, d_model, h = 2, 8, 128, 4

    root = jax.random.PRNGKey(0)
    keys = jax.random.split(root, 11)
    q = jax.random.normal(keys[0], (batch, seq, d_model), jnp.float32)
    k = jax.random.normal(keys[1], (batch, seq, d_model), jnp.float32)
    v = jax.random.normal(keys[2], (batch, seq, d_model), jnp.float32)

    def init_linear(kw, kb):
        bound = 1.0 / math.sqrt(d_model)
        w = jax.random.uniform(kw, (d_model, d_model), jnp.float32,
                               -bound, bound)
        b = jax.random.uniform(kb, (d_model,), jnp.float32, -bound, bound)
        return w, b

    w_q, b_q = init_linear(keys[3], keys[4])
    w_k, b_k = init_linear(keys[5], keys[6])
    w_v, b_v = init_linear(keys[7], keys[8])
    w_o, b_o = init_linear(keys[9], keys[10])
    params = dict(w_q=w_q, b_q=b_q, w_k=w_k, b_k=b_k,
                  w_v=w_v, b_v=b_v, w_o=w_o, b_o=b_o)

    # Pure-JAX f32 reference of the (intended) PyTorch forward.
    def reference(q, k, v):
        d_k = d_model // h

        def lin(x, w, b):
            return x @ w + b

        Q = lin(q, w_q, b_q).reshape(batch, seq, h, d_k).transpose(0, 2, 1, 3)
        K = lin(k, w_k, b_k).reshape(batch, seq, h, d_k).transpose(0, 2, 1, 3)
        V = lin(v, w_v, b_v).reshape(batch, seq, h, d_k).transpose(0, 2, 1, 3)
        S = (Q @ jnp.swapaxes(K, -2, -1)) / math.sqrt(d_k)
        P = jax.nn.softmax(S, axis=-1)
        X = (P @ V).transpose(0, 2, 1, 3).reshape(batch, seq, d_model)
        return lin(X, w_o, b_o)

    fwd = functools.partial(multi_head_attention_block, h=h, mask=None,
                            dropout_p=0.0)

    # Tolerance: MXU math runs in bf16 (f32 accumulation), so compare against
    # the f32 reference with a bf16-appropriate bound.
    TOL = 6e-2

    # 1) General (cross-attention) path: three separate projection kernels.
    out = jax.block_until_ready(jax.jit(fwd)(q, k, v, params))
    ref = reference(q, k, v)
    err = float(jnp.max(jnp.abs(out - ref)))
    assert err < TOL, f"cross-attention mismatch: max abs err {err}"

    # 2) Self-attention path: fused QKV projection + column-block flash inputs.
    out_sa = jax.block_until_ready(jax.jit(lambda x, p: fwd(x, x, x, p))(q, params))
    ref_sa = reference(q, q, q)
    err_sa = float(jnp.max(jnp.abs(out_sa - ref_sa)))
    assert err_sa < TOL, f"self-attention mismatch: max abs err {err_sa}"

    print("KERNEL_OK")
</pallas_src>

<mosaic_0001>
module attributes {stable_mosaic.version = 11 : i64} {
  func.func @_linear_kernel(%arg0: i32, %arg1: i32, %arg2: i32, %arg3: memref<16x128xbf16, #tpu.memory_space<vmem>>, %arg4: memref<128x128xbf16, #tpu.memory_space<vmem>>, %arg5: memref<1x128xf32, #tpu.memory_space<vmem>>, %arg6: memref<16x128xbf16, #tpu.memory_space<vmem>>, %arg7: memref<16x128xf32, #tpu.memory_space<vmem>>) attributes {dimension_semantics = [#tpu.dimension_semantics<parallel>, #tpu.dimension_semantics<parallel>, #tpu.dimension_semantics<arbitrary>], iteration_bounds = array<i64: 1, 1, 1>, scalar_prefetch = 0 : i64, scratch_operands = 1 : i64, tpu.core_type = #tpu.core_type<tc>, window_params = [{transform_indices = @transform_0, window_bounds = array<i64: 16, 128>}, {transform_indices = @transform_1, window_bounds = array<i64: 128, 128>}, {transform_indices = @transform_2, window_bounds = array<i64: 1, 128>}, {transform_indices = @transform_3, window_bounds = array<i64: 16, 128>}]} {
    %c0_i32 = arith.constant 0 : i32
    %0 = arith.cmpi eq, %arg2, %c0_i32 : i32
    %1 = arith.extui %0 : i1 to i32
    %c0_i32_0 = arith.constant 0 : i32
    %2 = arith.cmpi ne, %1, %c0_i32_0 : i32
    scf.if %2 {
      %c0_10 = arith.constant 0 : index
      %c0_11 = arith.constant 0 : index
      %12 = vector.load %arg5[%c0_10, %c0_11] : memref<1x128xf32, #tpu.memory_space<vmem>>, vector<1x128xf32>
      %13 = vector.shape_cast %12 : vector<1x128xf32> to vector<1x128xf32>
      %14 = vector.broadcast %13 : vector<1x128xf32> to vector<16x128xf32>
      %c0_12 = arith.constant 0 : index
      %c0_13 = arith.constant 0 : index
      %15 = vector.load %arg7[%c0_12, %c0_13] : memref<16x128xf32, #tpu.memory_space<vmem>>, vector<16x128xf32>
      tpu.vector_store %arg7[%c0_12, %c0_13], %14 {strides = array<i32>} : memref<16x128xf32, #tpu.memory_space<vmem>>, vector<16x128xf32>,
    } else {
    }
    %c0 = arith.constant 0 : index
    %c0_1 = arith.constant 0 : index
    %3 = vector.load %arg7[%c0, %c0_1] : memref<16x128xf32, #tpu.memory_space<vmem>>, vector<16x128xf32>
    %c0_2 = arith.constant 0 : index
    %c0_3 = arith.constant 0 : index
    %4 = vector.load %arg3[%c0_2, %c0_3] : memref<16x128xbf16, #tpu.memory_space<vmem>>, vector<16x128xbf16>
    %c0_4 = arith.constant 0 : index
    %c0_5 = arith.constant 0 : index
    %5 = vector.load %arg4[%c0_4, %c0_5] : memref<128x128xbf16, #tpu.memory_space<vmem>>, vector<128x128xbf16>
    %cst = arith.constant dense<0.000000e+00> : vector<16x128xf32>
    %6 = tpu.matmul %4, %5, %cst {dimension_numbers = #tpu.dot_dimension_numbers<[1], [0], [0], [1], [0, 0, 1, 1], [], []>} : vector<16x128xbf16>, vector<128x128xbf16>, vector<16x128xf32> -> vector<16x128xf32>
    %7 = arith.addf %3, %6 : vector<16x128xf32>
    %c0_6 = arith.constant 0 : index
    %c0_7 = arith.constant 0 : index
    %8 = vector.load %arg7[%c0_6, %c0_7] : memref<16x128xf32, #tpu.memory_space<vmem>>, vector<16x128xf32>
    tpu.vector_store %arg7[%c0_6, %c0_7], %7 {strides = array<i32>} : memref<16x128xf32, #tpu.memory_space<vmem>>, vector<16x128xf32>,
    %c0_i32_8 = arith.constant 0 : i32
    %9 = arith.cmpi eq, %arg2, %c0_i32_8 : i32
    %10 = arith.extui %9 : i1 to i32
    %c0_i32_9 = arith.constant 0 : i32
    %11 = arith.cmpi ne, %10, %c0_i32_9 : i32
    scf.if %11 {
      %c0_10 = arith.constant 0 : index
      %c0_11 = arith.constant 0 : index
      %12 = vector.load %arg7[%c0_10, %c0_11] : memref<16x128xf32, #tpu.memory_space<vmem>>, vector<16x128xf32>
      %13 = arith.truncf %12 : vector<16x128xf32> to vector<16x128xbf16>
      %c0_12 = arith.constant 0 : index
      %c0_13 = arith.constant 0 : index
      %14 = vector.load %arg6[%c0_12, %c0_13] : memref<16x128xbf16, #tpu.memory_space<vmem>>, vector<16x128xbf16>
      tpu.vector_store %arg6[%c0_12, %c0_13], %13 {strides = array<i32>} : memref<16x128xbf16, #tpu.memory_space<vmem>>, vector<16x128xbf16>,
    } else {
    }
    return
  }
  func.func @transform_0(%arg0: i32, %arg1: i32, %arg2: i32) -> (i32, i32) {
    %c0_i32 = arith.constant 0 : i32
    return %arg0, %arg2 : i32, i32
  }
  func.func @transform_1(%arg0: i32, %arg1: i32, %arg2: i32) -> (i32, i32) {
    %c0_i32 = arith.constant 0 : i32
    return %arg2, %arg1 : i32, i32
  }
  func.func @transform_2(%arg0: i32, %arg1: i32, %arg2: i32) -> (i32, i32) {
    %c0_i32 = arith.constant 0 : i32
    %c0_i32_0 = arith.constant 0 : i32
    return %c0_i32, %arg1 : i32, i32
  }
  func.func @transform_3(%arg0: i32, %arg1: i32, %arg2: i32) -> (i32, i32) {
    %c0_i32 = arith.constant 0 : i32
    return %arg0, %arg1 : i32, i32
  }
}

module attributes {stable_mosaic.version = 11 : i64} {
  func.func @_linear_kernel(%arg0: i32, %arg1: i32, %arg2: i32, %arg3: memref<16x128xbf16, #tpu.memory_space<vmem>>, %arg4: memref<128x128xbf16, #tpu.memory_space<vmem>>, %arg5: memref<1x128xf32, #tpu.memory_space<vmem>>, %arg6: memref<16x128xf32, #tpu.memory_space<vmem>>, %arg7: memref<16x128xf32, #tpu.memory_space<vmem>>) attributes {dimension_semantics = [#tpu.dimension_semantics<parallel>, #tpu.dimension_semantics<parallel>, #tpu.dimension_semantics<arbitrary>], iteration_bounds = array<i64: 1, 1, 1>, scalar_prefetch = 0 : i64, scratch_operands = 1 : i64, tpu.core_type = #tpu.core_type<tc>, window_params = [{transform_indices = @transform_0, window_bounds = array<i64: 16, 128>}, {transform_indices = @transform_1, window_bounds = array<i64: 128, 128>}, {transform_indices = @transform_2, window_bounds = array<i64: 1, 128>}, {transform_indices = @transform_3, window_bounds = array<i64: 16, 128>}]} {
    %c0_i32 = arith.constant 0 : i32
    %0 = arith.cmpi eq, %arg2, %c0_i32 : i32
    %1 = arith.extui %0 : i1 to i32
    %c0_i32_0 = arith.constant 0 : i32
    %2 = arith.cmpi ne, %1, %c0_i32_0 : i32
    scf.if %2 {
      %c0_10 = arith.constant 0 : index
      %c0_11 = arith.constant 0 : index
      %12 = vector.load %arg5[%c0_10, %c0_11] : memref<1x128xf32, #tpu.memory_space<vmem>>, vector<1x128xf32>
      %13 = vector.shape_cast %12 : vector<1x128xf32> to vector<1x128xf32>
      %14 = vector.broadcast %13 : vector<1x128xf32> to vector<16x128xf32>
      %c0_12 = arith.constant 0 : index
      %c0_13 = arith.constant 0 : index
      %15 = vector.load %arg7[%c0_12, %c0_13] : memref<16x128xf32, #tpu.memory_space<vmem>>, vector<16x128xf32>
      tpu.vector_store %arg7[%c0_12, %c0_13], %14 {strides = array<i32>} : memref<16x128xf32, #tpu.memory_space<vmem>>, vector<16x128xf32>,
    } else {
    }
    %c0 = arith.constant 0 : index
    %c0_1 = arith.constant 0 : index
    %3 = vector.load %arg7[%c0, %c0_1] : memref<16x128xf32, #tpu.memory_space<vmem>>, vector<16x128xf32>
    %c0_2 = arith.constant 0 : index
    %c0_3 = arith.constant 0 : index
    %4 = vector.load %arg3[%c0_2, %c0_3] : memref<16x128xbf16, #tpu.memory_space<vmem>>, vector<16x128xbf16>
    %c0_4 = arith.constant 0 : index
    %c0_5 = arith.constant 0 : index
    %5 = vector.load %arg4[%c0_4, %c0_5] : memref<128x128xbf16, #tpu.memory_space<vmem>>, vector<128x128xbf16>
    %cst = arith.constant dense<0.000000e+00> : vector<16x128xf32>
    %6 = tpu.matmul %4, %5, %cst {dimension_numbers = #tpu.dot_dimension_numbers<[1], [0], [0], [1], [0, 0, 1, 1], [], []>} : vector<16x128xbf16>, vector<128x128xbf16>, vector<16x128xf32> -> vector<16x128xf32>
    %7 = arith.addf %3, %6 : vector<16x128xf32>
    %c0_6 = arith.constant 0 : index
    %c0_7 = arith.constant 0 : index
    %8 = vector.load %arg7[%c0_6, %c0_7] : memref<16x128xf32, #tpu.memory_space<vmem>>, vector<16x128xf32>
    tpu.vector_store %arg7[%c0_6, %c0_7], %7 {strides = array<i32>} : memref<16x128xf32, #tpu.memory_space<vmem>>, vector<16x128xf32>,
    %c0_i32_8 = arith.constant 0 : i32
    %9 = arith.cmpi eq, %arg2, %c0_i32_8 : i32
    %10 = arith.extui %9 : i1 to i32
    %c0_i32_9 = arith.constant 0 : i32
    %11 = arith.cmpi ne, %10, %c0_i32_9 : i32
    scf.if %11 {
      %c0_10 = arith.constant 0 : index
      %c0_11 = arith.constant 0 : index
      %12 = vector.load %arg7[%c0_10, %c0_11] : memref<16x128xf32, #tpu.memory_space<vmem>>, vector<16x128xf32>
      %c0_12 = arith.constant 0 : index
      %c0_13 = arith.constant 0 : index
      %13 = vector.load %arg6[%c0_12, %c0_13] : memref<16x128xf32, #tpu.memory_space<vmem>>, vector<16x128xf32>
      tpu.vector_store %arg6[%c0_12, %c0_13], %12 {strides = array<i32>} : memref<16x128xf32, #tpu.memory_space<vmem>>, vector<16x128xf32>,
    } else {
    }
    return
  }
  func.func @transform_0(%arg0: i32, %arg1: i32, %arg2: i32) -> (i32, i32) {
    %c0_i32 = arith.constant 0 : i32
    return %arg0, %arg2 : i32, i32
  }
  func.func @transform_1(%arg0: i32, %arg1: i32, %arg2: i32) -> (i32, i32) {
    %c0_i32 = arith.constant 0 : i32
    return %arg2, %arg1 : i32, i32
  }
  func.func @transform_2(%arg0: i32, %arg1: i32, %arg2: i32) -> (i32, i32) {
    %c0_i32 = arith.constant 0 : i32
    %c0_i32_0 = arith.constant 0 : i32
    return %c0_i32, %arg1 : i32, i32
  }
  func.func @transform_3(%arg0: i32, %arg1: i32, %arg2: i32) -> (i32, i32) {
    %c0_i32 = arith.constant 0 : i32
    return %arg0, %arg1 : i32, i32
  }
}

module attributes {stable_mosaic.version = 11 : i64} {
  func.func @_flash_attn_kernel(%arg0: i32, %arg1: i32, %arg2: i32, %arg3: memref<1x8x128xbf16, #tpu.memory_space<vmem>>, %arg4: memref<1x8x128xbf16, #tpu.memory_space<vmem>>, %arg5: memref<1x8x128xbf16, #tpu.memory_space<vmem>>, %arg6: memref<1x8x128xbf16, #tpu.memory_space<vmem>>, %arg7: memref<8x4xf32, #tpu.memory_space<vmem>>, %arg8: memref<8x4xf32, #tpu.memory_space<vmem>>, %arg9: memref<1x8x128xf32, #tpu.memory_space<vmem>>) attributes {dimension_semantics = [#tpu.dimension_semantics<parallel>, #tpu.dimension_semantics<parallel>, #tpu.dimension_semantics<arbitrary>], iteration_bounds = array<i64: 2, 1, 1>, scalar_prefetch = 0 : i64, scratch_operands = 3 : i64, tpu.core_type = #tpu.core_type<tc>, window_params = [{transform_indices = @transform_0, window_bounds = array<i64: 1, 8, 128>}, {transform_indices = @transform_1, window_bounds = array<i64: 1, 8, 128>}, {transform_indices = @transform_2, window_bounds = array<i64: 1, 8, 128>}, {transform_indices = @transform_3, window_bounds = array<i64: 1, 8, 128>}]} {
    %c0_i32 = arith.constant 0 : i32
    %0 = arith.cmpi eq, %arg2, %c0_i32 : i32
    %1 = arith.extui %0 : i1 to i32
    %c0_i32_0 = arith.constant 0 : i32
    %2 = arith.cmpi ne, %1, %c0_i32_0 : i32
    scf.if %2 {
      %cst_103 = arith.constant 0xFF800000 : f32
      %138 = vector.broadcast %cst_103 : f32 to vector<8x4xf32>
      %c0_104 = arith.constant 0 : index
      %c0_105 = arith.constant 0 : index
      %139 = vector.load %arg7[%c0_104, %c0_105] : memref<8x4xf32, #tpu.memory_space<vmem>>, vector<8x4xf32>
      tpu.vector_store %arg7[%c0_104, %c0_105], %138 {strides = array<i32>} : memref<8x4xf32, #tpu.memory_space<vmem>>, vector<8x4xf32>,
      %cst_106 = arith.constant 0.000000e+00 : f32
      %140 = vector.broadcast %cst_106 : f32 to vector<8x4xf32>
      %c0_107 = arith.constant 0 : index
      %c0_108 = arith.constant 0 : index
      %141 = vector.load %arg8[%c0_107, %c0_108] : memref<8x4xf32, #tpu.memory_space<vmem>>, vector<8x4xf32>
      tpu.vector_store %arg8[%c0_107, %c0_108], %140 {strides = array<i32>} : memref<8x4xf32, #tpu.memory_space<vmem>>, vector<8x4xf32>,
      %cst_109 = arith.constant 0.000000e+00 : f32
      %142 = vector.broadcast %cst_109 : f32 to vector<1x8x128xf32>
      %c0_110 = arith.constant 0 : index
      %c0_111 = arith.constant 0 : index
      %c0_112 = arith.constant 0 : index
      %143 = vector.load %arg9[%c0_110, %c0_111, %c0_112] : memref<1x8x128xf32, #tpu.memory_space<vmem>>, vector<1x8x128xf32>
      tpu.vector_store %arg9[%c0_110, %c0_111, %c0_112], %142 {strides = array<i32>} : memref<1x8x128xf32, #tpu.memory_space<vmem>>, vector<1x8x128xf32>,
    } else {
    }
    %c0 = arith.constant 0 : index
    %c0_1 = arith.constant 0 : index
    %c0_2 = arith.constant 0 : index
    %3 = vector.load %arg3[%c0, %c0_1, %c0_2] : memref<1x8x128xbf16, #tpu.memory_space<vmem>>, vector<1x8x32xbf16>
    %4 = vector.shape_cast %3 : vector<1x8x32xbf16> to vector<8x32xbf16>
    %c0_3 = arith.constant 0 : index
    %c0_4 = arith.constant 0 : index
    %c0_5 = arith.constant 0 : index
    %5 = vector.load %arg4[%c0_3, %c0_4, %c0_5] : memref<1x8x128xbf16, #tpu.memory_space<vmem>>, vector<1x8x32xbf16>
    %6 = vector.shape_cast %5 : vector<1x8x32xbf16> to vector<8x32xbf16>
    %c0_6 = arith.constant 0 : index
    %c0_7 = arith.constant 0 : index
    %c0_8 = arith.constant 0 : index
    %7 = vector.load %arg5[%c0_6, %c0_7, %c0_8] : memref<1x8x128xbf16, #tpu.memory_space<vmem>>, vector<1x8x32xbf16>
    %8 = vector.shape_cast %7 : vector<1x8x32xbf16> to vector<8x32xbf16>
    %cst = arith.constant dense<0.000000e+00> : vector<8x8xf32>
    %9 = tpu.matmul %4, %6, %cst {dimension_numbers = #tpu.dot_dimension_numbers<[1], [1], [0], [0], [0, 0, 1, 0], [], []>} : vector<8x32xbf16>, vector<8x32xbf16>, vector<8x8xf32> -> vector<8x8xf32>
    %c0_9 = arith.constant 0 : index
    %c0_10 = arith.constant 0 : index
    %10 = vector.load %arg7[%c0_9, %c0_10] : memref<8x4xf32, #tpu.memory_space<vmem>>, vector<8x1xf32>
    %cst_11 = arith.constant dense<0xFF800000> : vector<8xf32>
    %11 = vector.multi_reduction <maximumf>, %9, %cst_11 [1] : vector<8x8xf32> to vector<8xf32>
    %12 = vector.shape_cast %11 : vector<8xf32> to vector<8x1xf32>
    %13 = arith.maximumf %10, %12 : vector<8x1xf32>
    %14 = arith.subf %10, %13 : vector<8x1xf32>
    %15 = math.exp %14 : vector<8x1xf32>
    %16 = vector.broadcast %13 : vector<8x1xf32> to vector<8x8xf32>
    %17 = arith.subf %9, %16 : vector<8x8xf32>
    %18 = math.exp %17 : vector<8x8xf32>
    %c0_12 = arith.constant 0 : index
    %c0_13 = arith.constant 0 : index
    %19 = vector.load %arg8[%c0_12, %c0_13] : memref<8x4xf32, #tpu.memory_space<vmem>>, vector<8x1xf32>
    %20 = arith.mulf %15, %19 : vector<8x1xf32>
    %cst_14 = arith.constant dense<0.000000e+00> : vector<8xf32>
    %21 = vector.multi_reduction <add>, %18, %cst_14 [1] : vector<8x8xf32> to vector<8xf32>
    %22 = vector.shape_cast %21 : vector<8xf32> to vector<8x1xf32>
    %23 = arith.addf %20, %22 : vector<8x1xf32>
    %c0_15 = arith.constant 0 : index
    %c0_16 = arith.constant 0 : index
    %24 = vector.load %arg8[%c0_15, %c0_16] : memref<8x4xf32, #tpu.memory_space<vmem>>, vector<8x1xf32>
    tpu.vector_store %arg8[%c0_15, %c0_16], %23 {strides = array<i32>} : memref<8x4xf32, #tpu.memory_space<vmem>>, vector<8x1xf32>,
    %25 = arith.truncf %18 : vector<8x8xf32> to vector<8x8xbf16>
    %cst_17 = arith.constant dense<0.000000e+00> : vector<8x32xf32>
    %26 = tpu.matmul %25, %8, %cst_17 {dimension_numbers = #tpu.dot_dimension_numbers<[1], [0], [0], [1], [0, 0, 1, 1], [], []>} : vector<8x8xbf16>, vector<8x32xbf16>, vector<8x32xf32> -> vector<8x32xf32>
    %c0_18 = arith.constant 0 : index
    %c0_19 = arith.constant 0 : index
    %c0_20 = arith.constant 0 : index
    %27 = vector.load %arg9[%c0_18, %c0_19, %c0_20] : memref<1x8x128xf32, #tpu.memory_space<vmem>>, vector<1x8x32xf32>
    %28 = vector.shape_cast %27 : vector<1x8x32xf32> to vector<8x32xf32>
    %29 = vector.broadcast %15 : vector<8x1xf32> to vector<8x32xf32>
    %30 = arith.mulf %29, %28 : vector<8x32xf32>
    %31 = arith.addf %30, %26 : vector<8x32xf32>
    %c0_21 = arith.constant 0 : index
    %c0_22 = arith.constant 0 : index
    %c0_23 = arith.constant 0 : index
    %32 = vector.load %arg9[%c0_21, %c0_22, %c0_23] : memref<1x8x128xf32, #tpu.memory_space<vmem>>, vector<1x8x32xf32>
    %33 = vector.shape_cast %32 : vector<1x8x32xf32> to vector<8x32xf32>
    %34 = vector.shape_cast %31 : vector<8x32xf32> to vector<1x8x32xf32>
    tpu.vector_store %arg9[%c0_21, %c0_22, %c0_23], %34 {strides = array<i32>} : memref<1x8x128xf32, #tpu.memory_space<vmem>>, vector<1x8x32xf32>,
    %c0_24 = arith.constant 0 : index
    %c0_25 = arith.constant 0 : index
    %35 = vector.load %arg7[%c0_24, %c0_25] : memref<8x4xf32, #tpu.memory_space<vmem>>, vector<8x1xf32>
    tpu.vector_store %arg7[%c0_24, %c0_25], %13 {strides = array<i32>} : memref<8x4xf32, #tpu.memory_space<vmem>>, vector<8x1xf32>,
    %c0_26 = arith.constant 0 : index
    %c0_27 = arith.constant 0 : index
    %c32 = arith.constant 32 : index
    %36 = vector.load %arg3[%c0_26, %c0_27, %c32] : memref<1x8x128xbf16, #tpu.memory_space<vmem>>, vector<1x8x32xbf16>
    %37 = vector.shape_cast %36 : vector<1x8x32xbf16> to vector<8x32xbf16>
    %c0_28 = arith.constant 0 : index
    %c0_29 = arith.constant 0 : index
    %c32_30 = arith.constant 32 : index
    %38 = vector.load %arg4[%c0_28, %c0_29, %c32_30] : memref<1x8x128xbf16, #tpu.memory_space<vmem>>, vector<1x8x32xbf16>
    %39 = vector.shape_cast %38 : vector<1x8x32xbf16> to vector<8x32xbf16>
    %c0_31 = arith.constant 0 : index
    %c0_32 = arith.constant 0 : index
    %c32_33 = arith.constant 32 : index
    %40 = vector.load %arg5[%c0_31, %c0_32, %c32_33] : memref<1x8x128xbf16, #tpu.memory_space<vmem>>, vector<1x8x32xbf16>
    %41 = vector.shape_cast %40 : vector<1x8x32xbf16> to vector<8x32xbf16>
    %cst_34 = arith.constant dense<0.000000e+00> : vector<8x8xf32>
    %42 = tpu.matmul %37, %39, %cst_34 {dimension_numbers = #tpu.dot_dimension_numbers<[1], [1], [0], [0], [0, 0, 1, 0], [], []>} : vector<8x32xbf16>, vector<8x32xbf16>, vector<8x8xf32> -> vector<8x8xf32>
    %c0_35 = arith.constant 0 : index
    %c1 = arith.constant 1 : index
    %43 = vector.load %arg7[%c0_35, %c1] : memref<8x4xf32, #tpu.memory_space<vmem>>, vector<8x1xf32>
    %cst_36 = arith.constant dense<0xFF800000> : vector<8xf32>
    %44 = vector.multi_reduction <maximumf>, %42, %cst_36 [1] : vector<8x8xf32> to vector<8xf32>
    %45 = vector.shape_cast %44 : vector<8xf32> to vector<8x1xf32>
    %46 = arith.maximumf %43, %45 : vector<8x1xf32>
    %47 = arith.subf %43, %46 : vector<8x1xf32>
    %48 = math.exp %47 : vector<8x1xf32>
    %49 = vector.broadcast %46 : vector<8x1xf32> to vector<8x8xf32>
    %50 = arith.subf %42, %49 : vector<8x8xf32>
    %51 = math.exp %50 : vector<8x8xf32>
    %c0_37 = arith.constant 0 : index
    %c1_38 = arith.constant 1 : index
    %52 = vector.load %arg8[%c0_37, %c1_38] : memref<8x4xf32, #tpu.memory_space<vmem>>, vector<8x1xf32>
    %53 = arith.mulf %48, %52 : vector<8x1xf32>
    %cst_39 = arith.constant dense<0.000000e+00> : vector<8xf32>
    %54 = vector.multi_reduction <add>, %51, %cst_39 [1] : vector<8x8xf32> to vector<8xf32>
    %55 = vector.shape_cast %54 : vector<8xf32> to vector<8x1xf32>
    %56 = arith.addf %53, %55 : vector<8x1xf32>
    %c0_40 = arith.constant 0 : index
    %c1_41 = arith.constant 1 : index
    %57 = vector.load %arg8[%c0_40, %c1_41] : memref<8x4xf32, #tpu.memory_space<vmem>>, vector<8x1xf32>
    tpu.vector_store %arg8[%c0_40, %c1_41], %56 {strides = array<i32>} : memref<8x4xf32, #tpu.memory_space<vmem>>, vector<8x1xf32>,
    %58 = arith.truncf %51 : vector<8x8xf32> to vector<8x8xbf16>
    %cst_42 = arith.constant dense<0.000000e+00> : vector<8x32xf32>
    %59 = tpu.matmul %58, %41, %cst_42 {dimension_numbers = #tpu.dot_dimension_numbers<[1], [0], [0], [1], [0, 0, 1, 1], [], []>} : vector<8x8xbf16>, vector<8x32xbf16>, vector<8x32xf32> -> vector<8x32xf32>
    %c0_43 = arith.constant 0 : index
    %c0_44 = arith.constant 0 : index
    %c32_45 = arith.constant 32 : index
    %60 = vector.load %arg9[%c0_43, %c0_44, %c32_45] : memref<1x8x128xf32, #tpu.memory_space<vmem>>, vector<1x8x32xf32>
    %61 = vector.shape_cast %60 : vector<1x8x32xf32> to vector<8x32xf32>
    %62 = vector.broadcast %48 : vector<8x1xf32> to vector<8x32xf32>
    %63 = arith.mulf %62, %61 : vector<8x32xf32>
    %64 = arith.addf %63, %59 : vector<8x32xf32>
    %c0_46 = arith.constant 0 : index
    %c0_47 = arith.constant 0 : index
    %c32_48 = arith.constant 32 : index
    %65 = vector.load %arg9[%c0_46, %c0_47, %c32_48] : memref<1x8x128xf32, #tpu.memory_space<vmem>>, vector<1x8x32xf32>
    %66 = vector.shape_cast %65 : vector<1x8x32xf32> to vector<8x32xf32>
    %67 = vector.shape_cast %64 : vector<8x32xf32> to vector<1x8x32xf32>
    tpu.vector_store %arg9[%c0_46, %c0_47, %c32_48], %67 {strides = array<i32>} : memref<1x8x128xf32, #tpu.memory_space<vmem>>, vector<1x8x32xf32>,
    %c0_49 = arith.constant 0 : index
    %c1_50 = arith.constant 1 : index
    %68 = vector.load %arg7[%c0_49, %c1_50] : memref<8x4xf32, #tpu.memory_space<vmem>>, vector<8x1xf32>
    tpu.vector_store %arg7[%c0_49, %c1_50], %46 {strides = array<i32>} : memref<8x4xf32, #tpu.memory_space<vmem>>, vector<8x1xf32>,
    %c0_51 = arith.constant 0 : index
    %c0_52 = arith.constant 0 : index
    %c64 = arith.constant 64 : index
    %69 = vector.load %arg3[%c0_51, %c0_52, %c64] : memref<1x8x128xbf16, #tpu.memory_space<vmem>>, vector<1x8x32xbf16>
    %70 = vector.shape_cast %69 : vector<1x8x32xbf16> to vector<8x32xbf16>
    %c0_53 = arith.constant 0 : index
    %c0_54 = arith.constant 0 : index
    %c64_55 = arith.constant 64 : index
    %71 = vector.load %arg4[%c0_53, %c0_54, %c64_55] : memref<1x8x128xbf16, #tpu.memory_space<vmem>>, vector<1x8x32xbf16>
    %72 = vector.shape_cast %71 : vector<1x8x32xbf16> to vector<8x32xbf16>
    %c0_56 = arith.constant 0 : index
    %c0_57 = arith.constant 0 : index
    %c64_58 = arith.constant 64 : index
    %73 = vector.load %arg5[%c0_56, %c0_57, %c64_58] : memref<1x8x128xbf16, #tpu.memory_space<vmem>>, vector<1x8x32xbf16>
    %74 = vector.shape_cast %73 : vector<1x8x32xbf16> to vector<8x32xbf16>
    %cst_59 = arith.constant dense<0.000000e+00> : vector<8x8xf32>
    %75 = tpu.matmul %70, %72, %cst_59 {dimension_numbers = #tpu.dot_dimension_numbers<[1], [1], [0], [0], [0, 0, 1, 0], [], []>} : vector<8x32xbf16>, vector<8x32xbf16>, vector<8x8xf32> -> vector<8x8xf32>
    %c0_60 = arith.constant 0 : index
    %c2 = arith.constant 2 : index
    %76 = vector.load %arg7[%c0_60, %c2] : memref<8x4xf32, #tpu.memory_space<vmem>>, vector<8x1xf32>
    %cst_61 = arith.constant dense<0xFF800000> : vector<8xf32>
    %77 = vector.multi_reduction <maximumf>, %75, %cst_61 [1] : vector<8x8xf32> to vector<8xf32>
    %78 = vector.shape_cast %77 : vector<8xf32> to vector<8x1xf32>
    %79 = arith.maximumf %76, %78 : vector<8x1xf32>
    %80 = arith.subf %76, %79 : vector<8x1xf32>
    %81 = math.exp %80 : vector<8x1xf32>
    %82 = vector.broadcast %79 : vector<8x1xf32> to vector<8x8xf32>
    %83 = arith.subf %75, %82 : vector<8x8xf32>
    %84 = math.exp %83 : vector<8x8xf32>
    %c0_62 = arith.constant 0 : index
    %c2_63 = arith.constant 2 : index
    %85 = vector.load %arg8[%c0_62, %c2_63] : memref<8x4xf32, #tpu.memory_space<vmem>>, vector<8x1xf32>
    %86 = arith.mulf %81, %85 : vector<8x1xf32>
    %cst_64 = arith.constant dense<0.000000e+00> : vector<8xf32>
    %87 = vector.multi_reduction <add>, %84, %cst_64 [1] : vector<8x8xf32> to vector<8xf32>
    %88 = vector.shape_cast %87 : vector<8xf32> to vector<8x1xf32>
    %89 = arith.addf %86, %88 : vector<8x1xf32>
    %c0_65 = arith.constant 0 : index
    %c2_66 = arith.constant 2 : index
    %90 = vector.load %arg8[%c0_65, %c2_66] : memref<8x4xf32, #tpu.memory_space<vmem>>, vector<8x1xf32>
    tpu.vector_store %arg8[%c0_65, %c2_66], %89 {strides = array<i32>} : memref<8x4xf32, #tpu.memory_space<vmem>>, vector<8x1xf32>,
    %91 = arith.truncf %84 : vector<8x8xf32> to vector<8x8xbf16>
    %cst_67 = arith.constant dense<0.000000e+00> : vector<8x32xf32>
    %92 = tpu.matmul %91, %74, %cst_67 {dimension_numbers = #tpu.dot_dimension_numbers<[1], [0], [0], [1], [0, 0, 1, 1], [], []>} : vector<8x8xbf16>, vector<8x32xbf16>, vector<8x32xf32> -> vector<8x32xf32>
    %c0_68 = arith.constant 0 : index
    %c0_69 = arith.constant 0 : index
    %c64_70 = arith.constant 64 : index
    %93 = vector.load %arg9[%c0_68, %c0_69, %c64_70] : memref<1x8x128xf32, #tpu.memory_space<vmem>>, vector<1x8x32xf32>
    %94 = vector.shape_cast %93 : vector<1x8x32xf32> to vector<8x32xf32>
    %95 = vector.broadcast %81 : vector<8x1xf32> to vector<8x32xf32>
    %96 = arith.mulf %95, %94 : vector<8x32xf32>
    %97 = arith.addf %96, %92 : vector<8x32xf32>
    %c0_71 = arith.constant 0 : index
    %c0_72 = arith.constant 0 : index
    %c64_73 = arith.constant 64 : index
    %98 = vector.load %arg9[%c0_71, %c0_72, %c64_73] : memref<1x8x128xf32, #tpu.memory_space<vmem>>, vector<1x8x32xf32>
    %99 = vector.shape_cast %98 : vector<1x8x32xf32> to vector<8x32xf32>
    %100 = vector.shape_cast %97 : vector<8x32xf32> to vector<1x8x32xf32>
    tpu.vector_store %arg9[%c0_71, %c0_72, %c64_73], %100 {strides = array<i32>} : memref<1x8x128xf32, #tpu.memory_space<vmem>>, vector<1x8x32xf32>,
    %c0_74 = arith.constant 0 : index
    %c2_75 = arith.constant 2 : index
    %101 = vector.load %arg7[%c0_74, %c2_75] : memref<8x4xf32, #tpu.memory_space<vmem>>, vector<8x1xf32>
    tpu.vector_store %arg7[%c0_74, %c2_75], %79 {strides = array<i32>} : memref<8x4xf32, #tpu.memory_space<vmem>>, vector<8x1xf32>,
    %c0_76 = arith.constant 0 : index
    %c0_77 = arith.constant 0 : index
    %c96 = arith.constant 96 : index
    %102 = vector.load %arg3[%c0_76, %c0_77, %c96] : memref<1x8x128xbf16, #tpu.memory_space<vmem>>, vector<1x8x32xbf16>
    %103 = vector.shape_cast %102 : vector<1x8x32xbf16> to vector<8x32xbf16>
    %c0_78 = arith.constant 0 : index
    %c0_79 = arith.constant 0 : index
    %c96_80 = arith.constant 96 : index
    %104 = vector.load %arg4[%c0_78, %c0_79, %c96_80] : memref<1x8x128xbf16, #tpu.memory_space<vmem>>, vector<1x8x32xbf16>
    %105 = vector.shape_cast %104 : vector<1x8x32xbf16> to vector<8x32xbf16>
    %c0_81 = arith.constant 0 : index
    %c0_82 = arith.constant 0 : index
    %c96_83 = arith.constant 96 : index
    %106 = vector.load %arg5[%c0_81, %c0_82, %c96_83] : memref<1x8x128xbf16, #tpu.memory_space<vmem>>, vector<1x8x32xbf16>
    %107 = vector.shape_cast %106 : vector<1x8x32xbf16> to vector<8x32xbf16>
    %cst_84 = arith.constant dense<0.000000e+00> : vector<8x8xf32>
    %108 = tpu.matmul %103, %105, %cst_84 {dimension_numbers = #tpu.dot_dimension_numbers<[1], [1], [0], [0], [0, 0, 1, 0], [], []>} : vector<8x32xbf16>, vector<8x32xbf16>, vector<8x8xf32> -> vector<8x8xf32>
    %c0_85 = arith.constant 0 : index
    %c3 = arith.constant 3 : index
    %109 = vector.load %arg7[%c0_85, %c3] : memref<8x4xf32, #tpu.memory_space<vmem>>, vector<8x1xf32>
    %cst_86 = arith.constant dense<0xFF800000> : vector<8xf32>
    %110 = vector.multi_reduction <maximumf>, %108, %cst_86 [1] : vector<8x8xf32> to vector<8xf32>
    %111 = vector.shape_cast %110 : vector<8xf32> to vector<8x1xf32>
    %112 = arith.maximumf %109, %111 : vector<8x1xf32>
    %113 = arith.subf %109, %112 : vector<8x1xf32>
    %114 = math.exp %113 : vector<8x1xf32>
    %115 = vector.broadcast %112 : vector<8x1xf32> to vector<8x8xf32>
    %116 = arith.subf %108, %115 : vector<8x8xf32>
    %117 = math.exp %116 : vector<8x8xf32>
    %c0_87 = arith.constant 0 : index
    %c3_88 = arith.constant 3 : index
    %118 = vector.load %arg8[%c0_87, %c3_88] : memref<8x4xf32, #tpu.memory_space<vmem>>, vector<8x1xf32>
    %119 = arith.mulf %114, %118 : vector<8x1xf32>
    %cst_89 = arith.constant dense<0.000000e+00> : vector<8xf32>
    %120 = vector.multi_reduction <add>, %117, %cst_89 [1] : vector<8x8xf32> to vector<8xf32>
    %121 = vector.shape_cast %120 : vector<8xf32> to vector<8x1xf32>
    %122 = arith.addf %119, %121 : vector<8x1xf32>
    %c0_90 = arith.constant 0 : index
    %c3_91 = arith.constant 3 : index
    %123 = vector.load %arg8[%c0_90, %c3_91] : memref<8x4xf32, #tpu.memory_space<vmem>>, vector<8x1xf32>
    tpu.vector_store %arg8[%c0_90, %c3_91], %122 {strides = array<i32>} : memref<8x4xf32, #tpu.memory_space<vmem>>, vector<8x1xf32>,
    %124 = arith.truncf %117 : vector<8x8xf32> to vector<8x8xbf16>
    %cst_92 = arith.constant dense<0.000000e+00> : vector<8x32xf32>
    %125 = tpu.matmul %124, %107, %cst_92 {dimension_numbers = #tpu.dot_dimension_numbers<[1], [0], [0], [1], [0, 0, 1, 1], [], []>} : vector<8x8xbf16>, vector<8x32xbf16>, vector<8x32xf32> -> vector<8x32xf32>
    %c0_93 = arith.constant 0 : index
    %c0_94 = arith.constant 0 : index
    %c96_95 = arith.constant 96 : index
    %126 = vector.load %arg9[%c0_93, %c0_94, %c96_95] : memref<1x8x128xf32, #tpu.memory_space<vmem>>, vector<1x8x32xf32>
    %127 = vector.shape_cast %126 : vector<1x8x32xf32> to vector<8x32xf32>
    %128 = vector.broadcast %114 : vector<8x1xf32> to vector<8x32xf32>
    %129 = arith.mulf %128, %127 : vector<8x32xf32>
    %130 = arith.addf %129, %125 : vector<8x32xf32>
    %c0_96 = arith.constant 0 : index
    %c0_97 = arith.constant 0 : index
    %c96_98 = arith.constant 96 : index
    %131 = vector.load %arg9[%c0_96, %c0_97, %c96_98] : memref<1x8x128xf32, #tpu.memory_space<vmem>>, vector<1x8x32xf32>
    %132 = vector.shape_cast %131 : vector<1x8x32xf32> to vector<8x32xf32>
    %133 = vector.shape_cast %130 : vector<8x32xf32> to vector<1x8x32xf32>
    tpu.vector_store %arg9[%c0_96, %c0_97, %c96_98], %133 {strides = array<i32>} : memref<1x8x128xf32, #tpu.memory_space<vmem>>, vector<1x8x32xf32>,
    %c0_99 = arith.constant 0 : index
    %c3_100 = arith.constant 3 : index
    %134 = vector.load %arg7[%c0_99, %c3_100] : memref<8x4xf32, #tpu.memory_space<vmem>>, vector<8x1xf32>
    tpu.vector_store %arg7[%c0_99, %c3_100], %112 {strides = array<i32>} : memref<8x4xf32, #tpu.memory_space<vmem>>, vector<8x1xf32>,
    %c0_i32_101 = arith.constant 0 : i32
    %135 = arith.cmpi eq, %arg2, %c0_i32_101 : i32
    %136 = arith.extui %135 : i1 to i32
    %c0_i32_102 = arith.constant 0 : i32
    %137 = arith.cmpi ne, %136, %c0_i32_102 : i32
    scf.if %137 {
      %c0_103 = arith.constant 0 : index
      %c0_104 = arith.constant 0 : index
      %138 = vector.load %arg8[%c0_103, %c0_104] : memref<8x4xf32, #tpu.memory_space<vmem>>, vector<8x1xf32>
      %139 = tpu.reciprocal %138 {approx = true} : vector<8x1xf32> -> vector<8x1xf32>
      %c0_105 = arith.constant 0 : index
      %c0_106 = arith.constant 0 : index
      %c0_107 = arith.constant 0 : index
      %140 = vector.load %arg9[%c0_105, %c0_106, %c0_107] : memref<1x8x128xf32, #tpu.memory_space<vmem>>, vector<1x8x32xf32>
      %141 = vector.shape_cast %140 : vector<1x8x32xf32> to vector<8x32xf32>
      %142 = vector.broadcast %139 : vector<8x1xf32> to vector<8x32xf32>
      %143 = arith.mulf %141, %142 : vector<8x32xf32>
      %144 = arith.truncf %143 : vector<8x32xf32> to vector<8x32xbf16>
      %c0_108 = arith.constant 0 : index
      %c0_109 = arith.constant 0 : index
      %c0_110 = arith.constant 0 : index
      %145 = vector.load %arg6[%c0_108, %c0_109, %c0_110] : memref<1x8x128xbf16, #tpu.memory_space<vmem>>, vector<1x8x32xbf16>
      %146 = vector.shape_cast %145 : vector<1x8x32xbf16> to vector<8x32xbf16>
      %147 = vector.shape_cast %144 : vector<8x32xbf16> to vector<1x8x32xbf16>
      tpu.vector_store %arg6[%c0_108, %c0_109, %c0_110], %147 {strides = array<i32>} : memref<1x8x128xbf16, #tpu.memory_space<vmem>>, vector<1x8x32xbf16>,
      %c0_111 = arith.constant 0 : index
      %c1_112 = arith.constant 1 : index
      %148 = vector.load %arg8[%c0_111, %c1_112] : memref<8x4xf32, #tpu.memory_space<vmem>>, vector<8x1xf32>
      %149 = tpu.reciprocal %148 {approx = true} : vector<8x1xf32> -> vector<8x1xf32>
      %c0_113 = arith.constant 0 : index
      %c0_114 = arith.constant 0 : index
      %c32_115 = arith.constant 32 : index
      %150 = vector.load %arg9[%c0_113, %c0_114, %c32_115] : memref<1x8x128xf32, #tpu.memory_space<vmem>>, vector<1x8x32xf32>
      %151 = vector.shape_cast %150 : vector<1x8x32xf32> to vector<8x32xf32>
      %152 = vector.broadcast %149 : vector<8x1xf32> to vector<8x32xf32>
      %153 = arith.mulf %151, %152 : vector<8x32xf32>
      %154 = arith.truncf %153 : vector<8x32xf32> to vector<8x32xbf16>
      %c0_116 = arith.constant 0 : index
      %c0_117 = arith.constant 0 : index
      %c32_118 = arith.constant 32 : index
      %155 = vector.load %arg6[%c0_116, %c0_117, %c32_118] : memref<1x8x128xbf16, #tpu.memory_space<vmem>>, vector<1x8x32xbf16>
      %156 = vector.shape_cast %155 : vector<1x8x32xbf16> to vector<8x32xbf16>
      %157 = vector.shape_cast %154 : vector<8x32xbf16> to vector<1x8x32xbf16>
      tpu.vector_store %arg6[%c0_116, %c0_117, %c32_118], %157 {strides = array<i32>} : memref<1x8x128xbf16, #tpu.memory_space<vmem>>, vector<1x8x32xbf16>,
      %c0_119 = arith.constant 0 : index
      %c2_120 = arith.constant 2 : index
      %158 = vector.load %arg8[%c0_119, %c2_120] : memref<8x4xf32, #tpu.memory_space<vmem>>, vector<8x1xf32>
      %159 = tpu.reciprocal %158 {approx = true} : vector<8x1xf32> -> vector<8x1xf32>
      %c0_121 = arith.constant 0 : index
      %c0_122 = arith.constant 0 : index
      %c64_123 = arith.constant 64 : index
      %160 = vector.load %arg9[%c0_121, %c0_122, %c64_123] : memref<1x8x128xf32, #tpu.memory_space<vmem>>, vector<1x8x32xf32>
      %161 = vector.shape_cast %160 : vector<1x8x32xf32> to vector<8x32xf32>
      %162 = vector.broadcast %159 : vector<8x1xf32> to vector<8x32xf32>
      %163 = arith.mulf %161, %162 : vector<8x32xf32>
      %164 = arith.truncf %163 : vector<8x32xf32> to vector<8x32xbf16>
      %c0_124 = arith.constant 0 : index
      %c0_125 = arith.constant 0 : index
      %c64_126 = arith.constant 64 : index
      %165 = vector.load %arg6[%c0_124, %c0_125, %c64_126] : memref<1x8x128xbf16, #tpu.memory_space<vmem>>, vector<1x8x32xbf16>
      %166 = vector.shape_cast %165 : vector<1x8x32xbf16> to vector<8x32xbf16>
      %167 = vector.shape_cast %164 : vector<8x32xbf16> to vector<1x8x32xbf16>
      tpu.vector_store %arg6[%c0_124, %c0_125, %c64_126], %167 {strides = array<i32>} : memref<1x8x128xbf16, #tpu.memory_space<vmem>>, vector<1x8x32xbf16>,
      %c0_127 = arith.constant 0 : index
      %c3_128 = arith.constant 3 : index
      %168 = vector.load %arg8[%c0_127, %c3_128] : memref<8x4xf32, #tpu.memory_space<vmem>>, vector<8x1xf32>
      %169 = tpu.reciprocal %168 {approx = true} : vector<8x1xf32> -> vector<8x1xf32>
      %c0_129 = arith.constant 0 : index
      %c0_130 = arith.constant 0 : index
      %c96_131 = arith.constant 96 : index
      %170 = vector.load %arg9[%c0_129, %c0_130, %c96_131] : memref<1x8x128xf32, #tpu.memory_space<vmem>>, vector<1x8x32xf32>
      %171 = vector.shape_cast %170 : vector<1x8x32xf32> to vector<8x32xf32>
      %172 = vector.broadcast %169 : vector<8x1xf32> to vector<8x32xf32>
      %173 = arith.mulf %171, %172 : vector<8x32xf32>
      %174 = arith.truncf %173 : vector<8x32xf32> to vector<8x32xbf16>
      %c0_132 = arith.constant 0 : index
      %c0_133 = arith.constant 0 : index
      %c96_134 = arith.constant 96 : index
      %175 = vector.load %arg6[%c0_132, %c0_133, %c96_134] : memref<1x8x128xbf16, #tpu.memory_space<vmem>>, vector<1x8x32xbf16>
      %176 = vector.shape_cast %175 : vector<1x8x32xbf16> to vector<8x32xbf16>
      %177 = vector.shape_cast %174 : vector<8x32xbf16> to vector<1x8x32xbf16>
      tpu.vector_store %arg6[%c0_132, %c0_133, %c96_134], %177 {strides = array<i32>} : memref<1x8x128xbf16, #tpu.memory_space<vmem>>, vector<1x8x32xbf16>,
    } else {
    }
    return
  }
  func.func @transform_0(%arg0: i32, %arg1: i32, %arg2: i32) -> (i32, i32, i32) {
    %c0_i32 = arith.constant 0 : i32
    %c0_i32_0 = arith.constant 0 : i32
    return %arg0, %arg1, %c0_i32 : i32, i32, i32
  }
  func.func @transform_1(%arg0: i32, %arg1: i32, %arg2: i32) -> (i32, i32, i32) {
    %c0_i32 = arith.constant 0 : i32
    %c0_i32_0 = arith.constant 0 : i32
    return %arg0, %arg2, %c0_i32 : i32, i32, i32
  }
  func.func @transform_2(%arg0: i32, %arg1: i32, %arg2: i32) -> (i32, i32, i32) {
    %c0_i32 = arith.constant 0 : i32
    %c0_i32_0 = arith.constant 0 : i32
    return %arg0, %arg2, %c0_i32 : i32, i32, i32
  }
  func.func @transform_3(%arg0: i32, %arg1: i32, %arg2: i32) -> (i32, i32, i32) {
    %c0_i32 = arith.constant 0 : i32
    %c0_i32_0 = arith.constant 0 : i32
    return %arg0, %arg1, %c0_i32 : i32, i32, i32
  }
}

</mosaic_0001>

<bundles_post_ra>
// kernel: multi_head_attention_block.5
= control target key start
LH: loop header
LB: loop body
LE: loop exit
PB: predicated region body
PF: predicated region fallthrough
CT: control target
= control target key end

     0   :  { %v225_v0 = vmov 0.0   ;;  %vm226_vm0 = vmmov 0   ;;  %s280_s1 = inlined_call_operand.vmem [shape: bf16[128,128], index: 1, kind: input, shape index: {}]   ;;  %s281_s0 = inlined_call_operand.vmem [shape: bf16[16,128], index: 0, kind: input, shape index: {}]   ;;  %s282_s2 = inlined_call_operand.vmem [shape: f32[1,128], index: 2, kind: input, shape index: {}]   ;;  %s283_s3 = inlined_call_operand.vmem [shape: bf16[16,128], index: 3, kind: output, shape index: {}]  }
   0x1   :  { %194 = vmatprep.subr.bf16.mxu0 %v225_v0  ;;  %v216_v1 = vld [vmem:[%s280_s1] sm:$0xff]   ;;  %210 = vmatprep.mubr.msk.bf16.mxu0 %vm226_vm0, %v225_v0  ;;  %v217_v2 = vld [vmem:[%s280_s1 + $0x8] sm:$0xff]   ;;  %v218_v3 = vld [vmem:[%s280_s1 + $0x10] sm:$0xff]  }
   0x2   :  { %195 = vmatpush3.bf16.msra.mxu0 %v216_v1  ;;  %v219_v4 = vld [vmem:[%s280_s1 + $0x18] sm:$0xff]   ;;  %v220_v5 = vld [vmem:[%s280_s1 + $0x20] sm:$0xff]   ;;  %v221_v6 = vld [vmem:[%s280_s1 + $0x28] sm:$0xff]  }
   0x3   :  { %196 = vmatprep.subr.bf16.mxu0 %v225_v0  ;;  %v222_v7 = vld [vmem:[%s280_s1 + $0x30] sm:$0xff]   ;;  %v223_v8 = vld [vmem:[%s280_s1 + $0x38] sm:$0xff]   ;;  %v224_v9 = vld [vmem:[%s281_s0] sm:$0xff]  }
   0x4   :  { %v166_v10 = vld [vmem:[%s282_s2] ss:$0 sm:$0xff] }
   0x6   :  { %197 = vmatpush3.bf16.msra.mxu0 %v217_v2 }
   0x7   :  { %198 = vmatprep.subr.bf16.mxu0 %v225_v0 }
   0xa   :  { %199 = vmatpush3.bf16.msra.mxu0 %v218_v3 }
   0xb   :  { %200 = vmatprep.subr.bf16.mxu0 %v225_v0 }
   0xe   :  { %201 = vmatpush3.bf16.msra.mxu0 %v219_v4 }
   0xf   :  { %202 = vmatprep.subr.bf16.mxu0 %v225_v0 }
  0x12   :  { %203 = vmatpush3.bf16.msra.mxu0 %v220_v5 }
  0x13   :  { %204 = vmatprep.subr.bf16.mxu0 %v225_v0 }
  0x16   :  { %205 = vmatpush3.bf16.msra.mxu0 %v221_v6 }
  0x17   :  { %206 = vmatprep.subr.bf16.mxu0 %v225_v0 }
  0x1a   :  { %207 = vmatpush3.bf16.msra.mxu0 %v222_v7 }
  0x1b   :  { %208 = vmatprep.subr.bf16.mxu0 %v225_v0 }
  0x1e   :  { %209 = vmatpush3.bf16.msra.mxu0 %v223_v8 }
  0x21   :  { %211 = vmatmul.mubr.bf16.vlgmr.msra.gmra.mrb[0].mxu0 %v224_v9 }
  0xf4   :  { %v136_v11 = vpop.f32.mrb[0].mxu0 }
  0xf5   :  { %v212_v12 = vpop.f32.mrb[1].mxu0  ;;  %v143_v14 = vadd.f32 %v166_v10, %v136_v11 }
  0xf6   :  { %v139_v13 = vpop.f32.mrb[2].mxu0 }
  0xf7   :  { %v144_v15 = vadd.f32 %v166_v10, %v139_v13  ;;  %v213_v16 = vpop.f32.mrb[3].mxu0 }
  0xf9   :  { %v183_v17 = vpack.c.bf16 %v144_v15, %v143_v14 }
  0xfb   :  { %184 = vst [vmem:[%s283_s3] sm:$0xff] %v183_v17  }

// kernel: multi_head_attention_block.9
= control target key start
LH: loop header
LB: loop body
LE: loop exit
PB: predicated region body
PF: predicated region fallthrough
CT: control target
= control target key end

     0   :  { %v248_v1 = vmov 0.0   ;;  %vm249_vm0 = vmmov 0   ;;  %s315_s0 = inlined_call_operand.vmem [shape: bf16[16,128], index: 0, kind: input, shape index: {}]   ;;  %s316_s1 = inlined_call_operand.vmem [shape: bf16[128,128], index: 1, kind: input, shape index: {}]   ;;  %s317_s2 = inlined_call_operand.vmem [shape: f32[1,128], index: 2, kind: input, shape index: {}]   ;;  %s318_s3 = inlined_call_operand.hbm [shape: f32[16,128], index: 3, kind: output, shape index: {}]  }
   0x1   :  { %v215_v0 = vld [vmem:[%s316_s1] sm:$0xff]   ;;  %190 = vmatprep.subr.bf16.mxu0 %v248_v1  ;;  %v216_v2 = vld [vmem:[%s316_s1 + $0x8] sm:$0xff]   ;;  %206 = vmatprep.mubr.msk.bf16.mxu0 %vm249_vm0, %v248_v1  ;;  %v217_v3 = vld [vmem:[%s316_s1 + $0x10] sm:$0xff]  }
   0x2   :  { %191 = vmatpush3.bf16.msra.mxu0 %v215_v0 }
   0x3   :  { %192 = vmatprep.subr.bf16.mxu0 %v248_v1 }
   0x6   :  { %193 = vmatpush3.bf16.msra.mxu0 %v216_v2 }
   0x7   :  { %194 = vmatprep.subr.bf16.mxu0 %v248_v1 }
   0x8   :  { %8 = vsyncpa [#allocation4], 0  ;;  %v218_v4 = vld [vmem:[%s316_s1 + $0x18] sm:$0xff]   ;;  %v219_v5 = vld [vmem:[%s316_s1 + $0x20] sm:$0xff]   ;;  %s250_s5 = smov [#allocation3]  }
   0x9   :  { %v220_v6 = vld [vmem:[%s316_s1 + $0x28] sm:$0xff]   ;;  %v221_v7 = vld [vmem:[%s316_s1 + $0x30] sm:$0xff]   ;;  %v222_v8 = vld [vmem:[%s316_s1 + $0x38] sm:$0xff]   ;;  %s160_s6 = sshll.u32 %s250_s5, 4  ;;  %s161_s6 = int_to_ptr.vmem [resolvable:$true] %s160_s6 }
   0xa   :  { %195 = vmatpush3.bf16.msra.mxu0 %v217_v3  ;;  %v223_v9 = vld [vmem:[%s315_s0] sm:$0xff]   ;;  %s224_s1 = scalar_lea.vmem %s161_s6, 256  ;;  %p229_p1 = scmp.lt.s32.totalorder %s161_s6, %s161_s6 }
   0xb   :  { %196 = vmatprep.subr.bf16.mxu0 %v248_v1  ;;  %v171_v10 = vld [vmem:[%s317_s2] ss:$0 sm:$0xff]  ;;  %p225_p0 = scmp.ne.s32.totalorder %s161_s6, %s224_s1  ;;  %p230_p2 = scmp.lt.s32.totalorder %s224_s1, %s224_s1 }
   0xd   :  { %p231_p3 = por %p230_p2, %p229_p1 }
   0xe   :  { %197 = vmatpush3.bf16.msra.mxu0 %v218_v4 }
   0xf   :  { %198 = vmatprep.subr.bf16.mxu0 %v248_v1  ;;  %p232_p4 = pnand %p231_p3, %p225_p0 }
  0x12   :  { %199 = vmatpush3.bf16.msra.mxu0 %v219_v5 }
  0x13   :  { %200 = vmatprep.subr.bf16.mxu0 %v248_v1 }
  0x16   :  { %201 = vmatpush3.bf16.msra.mxu0 %v220_v6 }
  0x17   :  { %202 = vmatprep.subr.bf16.mxu0 %v248_v1 }
  0x1a   :  { %203 = vmatpush3.bf16.msra.mxu0 %v221_v7 }
  0x1b   :  { %204 = vmatprep.subr.bf16.mxu0 %v248_v1 }
  0x1e   :  { %205 = vmatpush3.bf16.msra.mxu0 %v222_v8 }
  0x21   :  { %207 = vmatmul.mubr.bf16.vlgmr.msra.gmra.mrb[0].mxu0 %v223_v9 }
  0xf4   :  { %v137_v11 = vpop.f32.mrb[0].mxu0 }
  0xf5   :  { %v144_v12 = vadd.f32 %v171_v10, %v137_v11  ;;  %v208_v13 = vpop.f32.mrb[1].mxu0 }
  0xf6   :  { %v140_v14 = vpop.f32.mrb[2].mxu0 }
  0xf7   :  { %153 = vst [vmem:[#allocation3] sm:$0xff] %v144_v12  ;;  %v145_v15 = vadd.f32 %v171_v10, %v140_v14  ;;  %v209_v16 = vpop.f32.mrb[3].mxu0 }
  0xf9   :  { %154 = vst [vmem:[#allocation3 + $0x8] sm:$0xff] %v145_v15 }
  0xfa   :  { %235 = shalt.err (!%p232_p4)
}
  0xfb   :  { %s236_s7 = scalar_lea.hbm %s318_s3, 256 }
  0xfc   :  { %p237_p5 = scmp.ne.s32.totalorder %s318_s3, %s236_s7  ;;  %p240_p6 = scmp.lt.u32.totalorder %s236_s7, %s318_s3 }
  0xfe   :  { %p242_p7 = pnand %p240_p6, %p237_p5 }
 0x100   :  { %245 = shalt.err (!%p242_p7)
}
 0x101   :  { %s251_s12 = smov 128   ;;  %s252_s13 = smov 8  }
 0x102   :  { %166 = dma.vmem_to_hbm [thread:$0]  %s161_s6, 256, %s318_s3, [#allocation4], %s251_s12, %s251_s12, %s252_s13  }
 0x103   :  { %246 = dma.done.wait [#allocation4], 256  }
 0x104   :  { %247 = vsyncadd [#allocation4], 4294967040 }
 0x105   :  { %170 = vsyncpa [#allocation4], 1 }

// kernel: multi_head_attention_block.8
= control target key start
LH: loop header
LB: loop body
LE: loop exit
PB: predicated region body
PF: predicated region fallthrough
CT: control target
= control target key end

     0   :  { %s1230_s12 = smov 0   ;;  %s1232_s13 = smov 0   ;;  %s1433_s0 = inlined_call_operand.vmem [shape: bf16[2,8,128], index: 0, kind: input, shape index: {}]   ;;  %s1434_s1 = inlined_call_operand.vmem [shape: bf16[2,8,128], index: 1, kind: input, shape index: {}]   ;;  %s1435_s2 = inlined_call_operand.vmem [shape: bf16[2,8,128], index: 2, kind: input, shape index: {}]   ;;  %s1436_s3 = inlined_call_operand.vmem [shape: bf16[2,8,128], index: 3, kind: output, shape index: {}]  }
   0x1   :  { %s1234_s14 = smov 0  }
   0x2 LB: > { %s32_s15 = sadd.s32 1, %s1194_s13  ;;  %p1014_p0 = scmp.ge.s32.totalorder %s1198_s14, 1  ;;  %s1198_s14 = sphi %s1234_s14, %s13_s14   ;;  %s1194_s13 = sphi %s1232_s13, %s1438_s13   ;;  %s1190_s12 = sphi %s1230_s12, %s1437_s12  }
   0x3   : > { %p34_p1 = scmp.ge.s32.totalorder %s32_s15, 2  ;;  %p190_p2 = scmp.lt.s32.totalorder %s1198_s14, 3 }
   0x5   : > { %s1440_s15 = smov (%p34_p1, %s32_s15), 0  ;;  %p191_p3 = pnand %p1014_p0, %p190_p2 }
   0x6   : > { %p232_p4 = scmp.lt.s32.totalorder (!%p191_p3), %s1190_s12, 1  ;;  %v1200_v0 = vmov (!%p191_p3), 0.0   ;;  %vm1201_vm0 = vmmov (!%p191_p3), 0   ;;  %vm272_vm1 = vcmask (!%p191_p3), 261120   ;;  %vm265_vm2 = vcmask (!%p191_p3), 31744   ;;  %s1204_s23 = smov (!%p191_p3), 96  }
   0x7   : > { %194 = sbr.rel (%p191_p3) target bundleno = 1420 (0x58c), region = 32  ;;  %1054 = vmatprep.subr.bf16.mxu0 (!%p191_p3), %v1200_v0  ;;  %268 = vst [vmem:[#allocation4] sm:$0xff] (!%p191_p3), %v1200_v0  ;;  %1056 = vmatprep.mubr.msk.bf16.mxu0 (!%p191_p3), %vm1201_vm0, %v1200_v0  ;;  %v1202_v4 = vmov (!%p191_p3), -inf   ;;  %267 = vst.msk [vmem:[#allocation3] sm:$0xff] (!%p191_p3), %vm265_vm2, %v1200_v0  ;;  %vm320_vm3 = vcmask (!%p191_p3), 64512   ;;  %v1203_v10 = vmov (!%p191_p3), 0  }
   0x8   : > { %1060 = vmatprep.subr.bf16.mxu1 (!%p191_p3), %v1200_v0  ;;  %1062 = vmatprep.mubr.msk.bf16.mxu1 (!%p191_p3), %vm1201_vm0, %v1200_v0  ;;  %266 = vst.msk [vmem:[#allocation2] sm:$0xff] (!%p191_p3), %vm265_vm2, %v1202_v4  ;;  %s1205_s24 = smov (!%p191_p3), 64   ;;  %s1206_s25 = smov (!%p191_p3), 32   ;;  %vm342_vm4 = vcmask (!%p191_p3), 7168   ;;  %vm348_vm5 = vcmask (!%p191_p3), 1043456   ;;  %v1207_v54 = vmov (!%p191_p3), 1  }
   0x9   : > { %1136 = vset.pattern.permute.xlu0 (!%p191_p3), %v1203_v10  ;;  %1137 = vset.pattern.permute.xlu1 (!%p191_p3), %v1207_v54  ;;  %v1208_v57 = vmov (!%p191_p3), 2   ;;  %vm483_vm6 = vcmask (!%p191_p3), 15368   ;;  %vm633_vm7 = vcmask (!%p191_p3), 23568   ;;  %vm783_vm8 = vcmask (!%p191_p3), 31768  }
   0xa   : > { %vm549_vm9 = vcmask (!%p191_p3), 523520   ;;  %vm699_vm10 = vcmask (!%p191_p3), 785920   ;;  %vm849_vm11 = vcmask (!%p191_p3), 1048320   ;;  %vm865_vm12 = vcmask (!%p191_p3), 257024  }
   0xb   : > { %vm877_vm13 = vcmask (!%p191_p3), 519424   ;;  %vm889_vm14 = vcmask (!%p191_p3), 781824   ;;  %vm901_vm15 = vcmask (!%p191_p3), 1044224  }
   0xe   : > { %s1442_s12 = smov (!%p232_p4, %s1190_s12), 1 }
   0xf   : > { %s1255_s16 = sshll.u32 %s1442_s12, 2  ;;  %v1291_v17 = vld [vmem:[#allocation2] sm:$0xff] }
  0x10   : > { %s1261_s19 = scalar_lea.vmem %s1434_s1, %s1255_s16  ;;  %s1268_s22 = scalar_lea.vmem %s1433_s0, %s1255_s16 }
  0x11   : > { %v270_v1 = vld [vmem:[%s1261_s19] sm:$0xf]  ;;  %s1305_s28 = scalar_lea.vmem %s1435_s2, %s1255_s16  ;;  %s259_s4 = scalar_lea.vmem %s1436_s3, %s1255_s16 }
  0x12   : > { %v277_v2 = vsel %vm272_vm1, %v270_v1, 0  ;;  %v269_v3 = vld [vmem:[%s1268_s22] sm:$0xf]  ;;  %v1209_v1 = vmov 3  }
  0x13   : > { %1055 = vmatpush3.bf16.xpose.msra.mxu0 %v277_v2  ;;  %v1149_v11 = vld [vmem:[%s1261_s19] ss:$0 sps:$4 sm:$0xff]  }
  0x14   : > { %1072 = vmatprep.subr.bf16.mxu0 %v1200_v0  ;;  %413 = vrot.lane.b32.xlu1 %v1149_v11, %s1204_s23  ;;  %v1150_v12 = vld [vmem:[%s1268_s22] ss:$0 sps:$4 sm:$0xff]  }
  0x15   : > { %v1151_v13 = vld [vmem:[%s1261_s19] ss:$0 sps:$4 sm:$0xff]  }
  0x16   : > { %v1152_v14 = vld [vmem:[%s1268_s22] ss:$0 sps:$4 sm:$0xff]  }
  0x17   : > { %v1153_v15 = vld [vmem:[%s1261_s19] ss:$0 sps:$4 sm:$0xff]  }
  0x18   : > { %408 = vrot.lane.b32.xlu1 %v1150_v12, %s1204_s23  ;;  %v1154_v16 = vld [vmem:[%s1268_s22] ss:$0 sps:$4 sm:$0xff]  }
  0x19   : > { %v271_v21 = vld [vmem:[%s1305_s28] sm:$0xf] }
  0x1a   : > { %1057 = vmatmul.mubr.msk.bf16.vlgmr.msra.gmra.mrb[0].mxu0 %vm272_vm1, %v269_v3  ;;  %v350_v22 = vsel %vm348_vm5, %v271_v21, 0  ;;  %v1155_v63 = vld [vmem:[%s1305_s28] ss:$0 sps:$4 sm:$0xff]  }
  0x1b   : > { %1074 = vmatprep.mubr.msk.bf16.mxu0 %vm1201_vm0, %v1200_v0  ;;  %1061 = vmatpush3.bf16.msra.mxu1 %v350_v22  ;;  %v1156_v12 = vld [vmem:[%s1305_s28] ss:$0 sps:$4 sm:$0xff]  }
  0x1c   : > { %563 = vrot.lane.b32.xlu1 %v1151_v13, %s1205_s24  ;;  %1066 = vmatprep.subr.bf16.mxu1 %v1200_v0  ;;  %v1157_v13 = vld [vmem:[%s1305_s28] ss:$0 sps:$4 sm:$0xff]  }
  0x20   : > { %558 = vrot.lane.b32.xlu1 %v1152_v14, %s1205_s24 }
  0x24   : > { %713 = vrot.lane.b32.xlu1 %v1153_v15, %s1206_s25 }
  0x28   : > { %708 = vrot.lane.b32.xlu1 %v1154_v16, %s1206_s25 }
  0x86   : > { %v414_v26 = vpop.permute.xlu1 %413 }
  0x87   : > { %v419_v29 = vsel %vm272_vm1, %v414_v26, 0 }
  0x8a   : > { %v409_v27 = vpop.permute.xlu1 %408 }
  0x8e   : > { %v564_v31 = vpop.permute.xlu1 %563 }
  0x8f   : > { %v569_v33 = vsel %vm272_vm1, %v564_v31, 0 }
  0x92   : > { %v559_v32 = vpop.permute.xlu1 %558 }
  0x96   : > { %v714_v34 = vpop.permute.xlu1 %713 }
  0x97   : > { %v719_v35 = vsel %vm272_vm1, %v714_v34, 0 }
  0x9a   : > { %v709_v36 = vpop.permute.xlu1 %708 }
  0xed   : > { %v313_v5 = vpop.f32.mrb[0].mxu0 }
  0xee   : > { %v1058_v6 = vpop.f32.mrb[1].mxu0  ;;  %v321_v7 = vsel %vm320_vm3, %v313_v5, -inf }
  0xef   : > { %322 = vmax.xlane.f32.xlu0 %v321_v7  ;;  %v316_v8 = vpop.f32.mrb[2].mxu0 }
  0xf0   : > { %v1059_v9 = vpop.f32.mrb[3].mxu0 }
 0x17c   : > { %v323_v18 = vpop.xlane.xlu0 %322 }
 0x17d   : > { %v1294_v19 = vmax.f32 %v1291_v17, %v323_v18 }
 0x17f   : > { %v325_v20 = vsub.f32 %v1291_v17, %v1294_v19  ;;  %401 = vst.msk [vmem:[#allocation2] sm:$0xff] %vm342_vm4, %v1294_v19  ;;  %330 = vperm.xlu0 %1136, %v1294_v19  }
 0x181   : > { %v326_v61 = vmul.f32 1.442695, %v325_v20 }
 0x183   : > { %1138 = vset.pattern.permute.xlu0 %v1208_v57 }
 0x186   : > { %v1342_v59 = vld [vmem:[#allocation2] sm:$0xff] }
 0x1fe   : > { %v331_v23 = vpop.permute.xlu0 %330 }
 0x1ff   : > { %v333_v24 = vsub.f32 %v313_v5, %v331_v23 }
 0x201   : > { %v334_v25 = vmul.f32 1.442695, %v333_v24 }
 0x203   : > { %1158 = vpow2.f32 %v334_v25 }
 0x204   : > { %1160 = vpow2.f32 %v326_v61 }
 0x20d   : > { %v1310_v28 = vpop.eup %1158 }
 0x20e   : > { %v344_v30 = vpack.c.bf16 %v1310_v28, %v1310_v28  ;;  %v1359_v6 = vpop.eup %1160  ;;  %v338_v14 = vsel %vm320_vm3, %v1310_v28, 0.0 }
 0x210   : > { %1063 = vmatmul.mubr.msk.bf16.vlgmr.msra.gmra.mrb[0].mxu1 %vm320_vm3, %v344_v30 }
 0x211   : > { %1067 = vmatpush3.bf16.xpose.msra.mxu1 %v419_v29  ;;  %1068 = vmatprep.mubr.msk.bf16.mxu1 %vm1201_vm0, %v1200_v0 }
 0x212   : > { %1078 = vmatprep.subr.bf16.mxu1 %v1200_v0 }
 0x218   : > { %1069 = vmatmul.mubr.msk.bf16.vlgmr.msra.gmra.mrb[4].mxu1 %vm272_vm1, %v409_v27 }
 0x219   : > { %1079 = vmatpush3.bf16.xpose.msra.mxu1 %v569_v33  ;;  %1080 = vmatprep.mubr.msk.bf16.mxu1 %vm1201_vm0, %v1200_v0 }
 0x21a   : > { %1090 = vmatprep.subr.bf16.mxu1 %v1200_v0 }
 0x220   : > { %1081 = vmatmul.mubr.msk.bf16.vlgmr.msra.gmra.mrb[8].mxu1 %vm272_vm1, %v559_v32 }
 0x221   : > { %1091 = vmatpush3.bf16.xpose.msra.mxu1 %v719_v35  ;;  %1092 = vmatprep.mubr.msk.bf16.mxu1 %vm1201_vm0, %v1200_v0 }
 0x228   : > { %1093 = vmatmul.mubr.msk.bf16.vlgmr.msra.gmra.mrb[12].mxu1 %vm272_vm1, %v709_v36 }
 0x2e3   : > { %v1329_v37 = vpop.f32.mrb[0].mxu1 }
 0x2e4   : > { %v1064_v38 = vpop.f32.mrb[1].mxu1 }
 0x2e5   : > { %v389_v39 = vpop.f32.mrb[2].mxu1 }
 0x2e6   : > { %v1065_v40 = vpop.f32.mrb[3].mxu1 }
 0x2eb   : > { %v455_v41 = vpop.f32.mrb[4].mxu1 }
 0x2ec   : > { %v1070_v42 = vpop.f32.mrb[5].mxu1  ;;  %v462_v43 = vsel %vm320_vm3, %v455_v41, -inf }
 0x2ed   : > { %463 = vmax.xlane.f32.xlu1 %v462_v43  ;;  %v458_v44 = vpop.f32.mrb[6].mxu1 }
 0x2ee   : > { %v1071_v45 = vpop.f32.mrb[7].mxu1 }
 0x2f3   : > { %v1332_v46 = vpop.f32.mrb[8].mxu1 }
 0x2f4   : > { %v1082_v47 = vpop.f32.mrb[9].mxu1  ;;  %v612_v48 = vsel %vm320_vm3, %v1332_v46, -inf }
 0x2f5   : > { %613 = vmax.xlane.f32.xlu0 %v612_v48  ;;  %v608_v49 = vpop.f32.mrb[10].mxu1 }
 0x2f6   : > { %v1083_v50 = vpop.f32.mrb[11].mxu1 }
 0x2fb   : > { %v1336_v51 = vpop.f32.mrb[12].mxu1 }
 0x2fc   : > { %v1094_v52 = vpop.f32.mrb[13].mxu1  ;;  %v762_v53 = vsel %vm320_vm3, %v1336_v51, -inf }
 0x2fd   : > { %v758_v55 = vpop.f32.mrb[14].mxu1  ;;  %763 = vmax.xlane.f32.xlu1 %v762_v53 }
 0x2fe   : > { %v1095_v56 = vpop.f32.mrb[15].mxu1 }
 0x37a   : > { %v464_v58 = vpop.xlane.xlu1 %463 }
 0x37b   : > { %v1345_v60 = vmax.f32 %v1342_v59, %v464_v58 }
 0x37d   : > { %v466_v62 = vsub.f32 %v1342_v59, %v1345_v60  ;;  %551 = vst.msk [vmem:[#allocation2] sm:$0xff] %vm483_vm6, %v1345_v60  ;;  %471 = vperm.xlu1 %1137, %v1345_v60  }
 0x37f   : > { %v467_v44 = vmul.f32 1.442695, %v466_v62 }
 0x381   : > { %489 = vrot.lane.b32.xlu1 %v1155_v63, %s1204_s23 }
 0x382   : > { %1139 = vset.pattern.permute.xlu1 %v1209_v1  ;;  %v614_v2 = vpop.xlane.xlu0 %613 }
 0x384   : > { %v611_v3 = vld [vmem:[#allocation2] sm:$0xff] }
 0x385   : > { %v615_v4 = vmax.f32 %v611_v3, %v614_v2 }
 0x387   : > { %v616_v5 = vsub.f32 %v611_v3, %v615_v4  ;;  %701 = vst.msk [vmem:[#allocation2] sm:$0xff] %vm633_vm7, %v615_v4  ;;  %621 = vperm.xlu0 %1138, %v615_v4  }
 0x389   : > { %v617_v32 = vmul.f32 1.442695, %v616_v5 }
 0x38a   : > { %v764_v7 = vpop.xlane.xlu1 %763 }
 0x38b   : > { %1140 = vset.pattern.permute.xlu0 %v1203_v10 }
 0x38c   : > { %395 = vperm.xlu0 %1140, %v1359_v6  }
 0x38e   : > { %v1363_v8 = vld [vmem:[#allocation2] sm:$0xff] }
 0x38f   : > { %v1366_v9 = vmax.f32 %v1363_v8, %v764_v7 }
 0x390   : > { %1142 = vset.pattern.permute.xlu0 %v1208_v57 }
 0x391   : > { %v766_v11 = vsub.f32 %v1363_v8, %v1366_v9  ;;  %851 = vst.msk [vmem:[#allocation2] sm:$0xff] %vm783_vm8, %v1366_v9  ;;  %771 = vperm.xlu1 %1139, %v1366_v9  }
 0x393   : > { %v767_v53 = vmul.f32 1.442695, %v766_v11 }
 0x395   : > { %639 = vrot.lane.b32.xlu1 %v1156_v12, %s1205_s24 }
 0x396   : > { %1141 = vset.pattern.permute.xlu1 %v1207_v54 }
 0x399   : > { %789 = vrot.lane.b32.xlu1 %v1157_v13, %s1206_s25 }
 0x3bd   : > { %339 = vadd.xlane.f32.xlu1 %v338_v14 }
 0x3fc   : > { %v472_v15 = vpop.permute.xlu1 %471 }
 0x3fd   : > { %v474_v16 = vsub.f32 %v455_v41, %v472_v15 }
 0x3ff   : > { %v475_v17 = vmul.f32 1.442695, %v474_v16 }
 0x400   : > { %v490_v18 = vpop.permute.xlu1 %489 }
 0x401   : > { %1162 = vpow2.f32 %v475_v17  ;;  %v495_v19 = vsel %vm348_vm5, %v490_v18, 0 }
 0x402   : > { %1073 = vmatpush3.bf16.msra.mxu0 %v495_v19 }
 0x403   : > { %1084 = vmatprep.subr.bf16.mxu0 %v1200_v0 }
 0x406   : > { %v622_v20 = vpop.permute.xlu0 %621 }
 0x407   : > { %v624_v21 = vsub.f32 %v1332_v46, %v622_v20 }
 0x409   : > { %v625_v22 = vmul.f32 1.442695, %v624_v21 }
 0x40b   : > { %v1163_v23 = vpop.eup %1162  ;;  %1164 = vpow2.f32 %v625_v22  ;;  %v396_v24 = vpop.permute.xlu0 %395 }
 0x40c   : > { %v398_v25 = vmul.f32 0.0, %v396_v24  ;;  %v479_v26 = vsel %vm320_vm3, %v1163_v23, 0.0  ;;  %v485_v27 = vpack.c.bf16 %v1163_v23, %v1163_v23 }
 0x40d   : > { %480 = vadd.xlane.f32.xlu0 %v479_v26 }
 0x40e   : > { %v399_v28 = vadd.f32 %v398_v25, %v1329_v37  ;;  %1075 = vmatmul.mubr.msk.bf16.vlgmr.msra.gmra.mrb[4].mxu0 %vm320_vm3, %v485_v27 }
 0x40f   : > { %1086 = vmatprep.mubr.msk.bf16.mxu0 %vm1201_vm0, %v1200_v0 }
 0x410   : > { %400 = vst.msk [vmem:[#allocation4] sm:$0xff] %vm272_vm1, %v399_v28  ;;  %v772_v29 = vpop.permute.xlu1 %771 }
 0x411   : > { %v774_v30 = vsub.f32 %v1336_v51, %v772_v29 }
 0x413   : > { %v775_v31 = vmul.f32 1.442695, %v774_v30 }
 0x414   : > { %v640_v33 = vpop.permute.xlu1 %639 }
 0x415   : > { %v1165_v34 = vpop.eup %1164  ;;  %1166 = vpow2.f32 %v775_v31  ;;  %v645_v35 = vsel %vm348_vm5, %v640_v33, 0 }
 0x416   : > { %1085 = vmatpush3.bf16.msra.mxu0 %v645_v35  ;;  %v629_v36 = vsel %vm320_vm3, %v1165_v34, 0.0  ;;  %v635_v37 = vpack.c.bf16 %v1165_v34, %v1165_v34  ;;  %1168 = vpow2.f32 %v617_v32 }
 0x417   : > { %630 = vadd.xlane.f32.xlu1 %v629_v36  ;;  %1096 = vmatprep.subr.bf16.mxu0 %v1200_v0  ;;  %1170 = vpow2.f32 %v467_v44  ;;  %v537_v18 = vld [vmem:[#allocation4] sm:$0xff] }
 0x418   : > { %v790_v38 = vpop.permute.xlu1 %789  ;;  %1172 = vpow2.f32 %v767_v53 }
 0x419   : > { %1087 = vmatmul.mubr.msk.bf16.vlgmr.msra.gmra.mrb[8].mxu0 %vm320_vm3, %v635_v37  ;;  %v795_v39 = vsel %vm348_vm5, %v790_v38, 0 }
 0x41a   : > { %1097 = vmatpush3.bf16.msra.mxu0 %v795_v39  ;;  %1098 = vmatprep.mubr.msk.bf16.mxu0 %vm1201_vm0, %v1200_v0  ;;  %v336_v0 = vld [vmem:[#allocation3] sm:$0xff] }
 0x41b   : > { %v337_v46 = vmul.f32 %v1359_v6, %v336_v0 }
 0x41f   : > { %v1167_v40 = vpop.eup %1166 }
 0x420   : > { %v779_v41 = vsel %vm320_vm3, %v1167_v40, 0.0  ;;  %v785_v42 = vpack.c.bf16 %v1167_v40, %v1167_v40  ;;  %v1169_v43 = vpop.eup %1168 }
 0x421   : > { %780 = vadd.xlane.f32.xlu1 %v779_v41  ;;  %v1171_v45 = vpop.eup %1170 }
 0x422   : > { %1099 = vmatmul.mubr.msk.bf16.vlgmr.msra.gmra.mrb[12].mxu0 %vm320_vm3, %v785_v42  ;;  %v1173_v60 = vpop.eup %1172 }
 0x423   : > { %690 = vperm.xlu0 %1142, %v1169_v43  }
 0x427   : > { %1148 = vset.pattern.permute.xlu0 %v1209_v1 }
 0x432   : > { %540 = vperm.xlu1 %1141, %v1171_v45  }
 0x436   : > { %1143 = vset.pattern.permute.xlu1 %v1209_v1 }
 0x44a   : > { %v340_v47 = vpop.xlane.xlu1 %339 }
 0x44b   : > { %v341_v48 = vadd.f32 %v340_v47, %v337_v46 }
 0x44d   : > { %343 = vst.msk [vmem:[#allocation3] sm:$0xff] %vm342_vm4, %v341_v48 }
 0x454   : > { %v477_v49 = vld [vmem:[#allocation3] sm:$0xff] }
 0x455   : > { %v478_v50 = vmul.f32 %v1171_v45, %v477_v49 }
 0x49a   : > { %v481_v51 = vpop.xlane.xlu0 %480 }
 0x49b   : > { %v482_v52 = vadd.f32 %v481_v51, %v478_v50 }
 0x49d   : > { %484 = vst.msk [vmem:[#allocation3] sm:$0xff] %vm483_vm6, %v482_v52 }
 0x4a2   : > { %v691_v23 = vpop.permute.xlu0 %690 }
 0x4a4   : > { %v627_v55 = vld [vmem:[#allocation3] sm:$0xff]  ;;  %v631_v58 = vpop.xlane.xlu1 %630 }
 0x4a5   : > { %v628_v56 = vmul.f32 %v1169_v43, %v627_v55 }
 0x4a7   : > { %v632_v59 = vadd.f32 %v631_v58, %v628_v56 }
 0x4a9   : > { %634 = vst.msk [vmem:[#allocation3] sm:$0xff] %vm633_vm7, %v632_v59 }
 0x4ae   : > { %v781_v63 = vpop.xlane.xlu1 %780 }
 0x4b0   : > { %v777_v61 = vld [vmem:[#allocation3] sm:$0xff] }
 0x4b1   : > { %v778_v62 = vmul.f32 %v1173_v60, %v777_v61 }
 0x4b3   : > { %v782_v2 = vadd.f32 %v781_v63, %v778_v62 }
 0x4b5   : > { %784 = vst.msk [vmem:[#allocation3] sm:$0xff] %vm783_vm8, %v782_v2 }
 0x4bc   : > { %v855_v6 = vld [vmem:[#allocation3] sm:$0xff] }
 0x4bd   : > { %1174 = vrcp.f32 %v855_v6 }
 0x4c7   : > { %v1175_v13 = vpop.eup %1174 }
 0x4e1   : > { %v531_v3 = vpop.f32.mrb[4].mxu0 }
 0x4e2   : > { %545 = vrot.lane.b32.xlu1 %v531_v3, %s1206_s25  ;;  %v1076_v4 = vpop.f32.mrb[5].mxu0 }
 0x4e3   : > { %v534_v5 = vpop.f32.mrb[6].mxu0 }
 0x4e4   : > { %v1077_v7 = vpop.f32.mrb[7].mxu0 }
 0x4e6   : > { %840 = vperm.xlu1 %1143, %v1173_v60  }
 0x4ea   : > { %1144 = vset.pattern.permute.xlu1 %v1203_v10  ;;  %v541_v10 = vpop.permute.xlu1 %540 }
 0x4eb   : > { %v543_v19 = vmul.f32 %v541_v10, %v537_v18 }
 0x4ec   : > { %v681_v8 = vpop.f32.mrb[8].mxu0 }
 0x4ed   : > { %695 = vrot.lane.b32.xlu1 %v681_v8, %s1205_s24  ;;  %v1088_v9 = vpop.f32.mrb[9].mxu0 }
 0x4ee   : > { %v684_v11 = vpop.f32.mrb[10].mxu0 }
 0x4ef   : > { %v1089_v12 = vpop.f32.mrb[11].mxu0 }
 0x4f1   : > { %860 = vperm.xlu1 %1144, %v1175_v13  }
 0x4f5   : > { %1145 = vset.pattern.permute.xlu1 %v1207_v54  ;;  %v831_v14 = vpop.f32.mrb[12].mxu0 }
 0x4f6   : > { %872 = vperm.xlu1 %1145, %v1175_v13   ;;  %v1100_v15 = vpop.f32.mrb[13].mxu0 }
 0x4f7   : > { %v834_v16 = vpop.f32.mrb[14].mxu0 }
 0x4f8   : > { %v1101_v17 = vpop.f32.mrb[15].mxu0 }
 0x4fa   : > { %845 = vrot.lane.b32.xlu1 %v831_v14, %s1204_s23 }
 0x4fb   : > { %1146 = vset.pattern.permute.xlu1 %v1208_v57 }
 0x4fe   : > { %884 = vperm.xlu1 %1146, %v1175_v13  }
 0x502   : > { %1147 = vset.pattern.permute.xlu1 %v1209_v1 }
 0x503   : > { %896 = vperm.xlu1 %1147, %v1175_v13  }
 0x554   : > { %v546_v20 = vpop.permute.xlu1 %545 }
 0x555   : > { %v548_v21 = vadd.f32 %v546_v20, %v543_v19 }
 0x557   : > { %550 = vst.msk [vmem:[#allocation4] sm:$0xff] %vm549_vm9, %v548_v21 }
 0x55e   : > { %v687_v22 = vld [vmem:[#allocation4] sm:$0xff] }
 0x55f   : > { %v693_v24 = vmul.f32 %v691_v23, %v687_v22 }
 0x565   : > { %v841_v54 = vpop.permute.xlu1 %840 }
 0x569   : > { %v696_v25 = vpop.permute.xlu1 %695 }
 0x56a   : > { %v698_v26 = vadd.f32 %v696_v25, %v693_v24 }
 0x56c   : > { %700 = vst.msk [vmem:[#allocation4] sm:$0xff] %vm699_vm10, %v698_v26 }
 0x570   : > { %v861_v57 = vpop.permute.xlu1 %860 }
 0x573   : > { %v837_v1 = vld [vmem:[#allocation4] sm:$0xff] }
 0x574   : > { %v843_v28 = vmul.f32 %v841_v54, %v837_v1 }
 0x575   : > { %v873_v27 = vpop.permute.xlu1 %872 }
 0x579   : > { %v846_v29 = vpop.permute.xlu1 %845 }
 0x57a   : > { %v848_v30 = vadd.f32 %v846_v29, %v843_v28 }
 0x57c   : > { %850 = vst.msk [vmem:[#allocation4] sm:$0xff] %vm849_vm11, %v848_v30 }
 0x57d   : > { %v885_v31 = vpop.permute.xlu1 %884 }
 0x582   : > { %v897_v32 = vpop.permute.xlu1 %896 }
 0x583   : > { %v857_v33 = vld [vmem:[#allocation4] sm:$0xff] }
 0x584   : > { %v863_v34 = vmul.f32 %v861_v57, %v857_v33  ;;  %v875_v35 = vmul.f32 %v873_v27, %v857_v33  ;;  %v887_v36 = vmul.f32 %v885_v31, %v857_v33  ;;  %v899_v37 = vmul.f32 %v897_v32, %v857_v33 }
 0x586   : > { %v864_v38 = vpack.c.bf16 %v863_v34, %v863_v34  ;;  %v876_v39 = vpack.c.bf16 %v875_v35, %v875_v35  ;;  %v888_v40 = vpack.c.bf16 %v887_v36, %v887_v36  ;;  %v900_v41 = vpack.c.bf16 %v899_v37, %v899_v37 }
 0x588   : > { %866 = vst.msk [vmem:[%s259_s4] sm:$0xf] %vm865_vm12, %v864_v38 }
 0x589   : > { %878 = vst.msk [vmem:[%s259_s4] sm:$0xf] %vm877_vm13, %v876_v39 }
 0x58a   : > { %890 = vst.msk [vmem:[%s259_s4] sm:$0xf] %vm889_vm14, %v888_v40 }
 0x58b   : > { %902 = vst.msk [vmem:[%s259_s4] sm:$0xf] %vm901_vm15, %v900_v41 }
 0x58c PF: > { %s13_s14 = sadd.s32 1, %s1198_s14   ;;  %s1437_s12 = smov %s1194_s13 }
 0x58d   : > { %p10_p5 = scmp.ge.s32.totalorder %s13_s14, 4   ;;  %s1438_s13 = smov %s1440_s15 }
 0x58f   :  { %12 = sbr.rel (!%p10_p5) target bundleno = 2 (0x2), region = 76 }

</bundles_post_ra>
